<compile_context>
chip_gen: v7x
topology: tpu7x:2x2x1
jax: 0.10.0
libtpu: 0.0.40
codegen_flags: <defaults>
</compile_context>

<pallas_src>
import jax
import jax.numpy as jnp
from jax.experimental import pallas as pl
from jax.experimental.pallas import tpu as pltpu

KH, KW = 5, 5
PAD = 2
GUARD = 8          # zero guard rows appended at an aligned (multiple-of-8) boundary


def _conv5x5_tanh_kernel(x_ref, w_ref, b_ref, o_ref):
    # x_ref: (1, H, W) f32 VMEM  one input plane (lane-dense)
    # w_ref: (KH, KW)  f32 SMEM  conv weights (scalar reads)
    # b_ref: (1,)      f32 SMEM  conv bias
    # o_ref: (1, H, W) f32 VMEM  one output plane
    _, H, W = o_ref.shape
    HP = H + GUARD

    col = jax.lax.broadcasted_iota(jnp.int32, (1, W), 1)   # tiny column-index mask
    zero_rows = jnp.zeros((GUARD, W), jnp.float32)

    acc = None
    for dj in range(KW):
        # ---- column halo: shift right by s = PAD - dj, zero the wrapped lanes
        s = PAD - dj
        x = x_ref[0]                       # re-read per dj: keeps live vregs < 64
        if s == 0:
            plane = x
        else:
            rolled_c = pltpu.roll(x, shift=s % W, axis=1)   # XLU lane rotate
            if s > 0:
                plane = jnp.where(col >= s, rolled_c, 0.0)
            else:
                plane = jnp.where(col < W + s, rolled_c, 0.0)

        # ---- row halo: 8 zero guard rows appended at the aligned row boundary
        plane_padded = jnp.concatenate([plane, zero_rows], axis=0)   # (H+8, W)

        # ---- 5 row taps via sublane rotates; wrapped rows land on guard zeros
        for di in range(KH):
            shift_r = (PAD - di) % HP
            if shift_r == 0:
                tap = plane_padded[:H, :]                    # aligned value slice
            else:
                tap = pltpu.roll(plane_padded, shift=shift_r, axis=0)[:H, :]
            w = w_ref[di, dj]
            if acc is None:
                acc = tap * w + b_ref[0]                     # bias + first tap fold
            else:
                acc = acc + tap * w

    o_ref[0] = jnp.tanh(acc)                                 # EUP transcendental


@jax.jit
def conv5x5_tanh(x_nchw, weight, bias):
    """x_nchw: (N, 1, H, W) f32; weight: (1, 1, 5, 5) f32; bias: (1,) f32."""
    N, C, H, W = x_nchw.shape
    assert C == 1, "ModelTanh has in_channels = out_channels = 1"
    P = N * C
    x_planes = x_nchw.reshape(P, H, W)     # free reshape, stays lane-dense

    out = pl.pallas_call(
        _conv5x5_tanh_kernel,
        out_shape=jax.ShapeDtypeStruct((P, H, W), jnp.float32),
        grid=(P,),
        in_specs=[
            pl.BlockSpec((1, H, W), lambda p: (p, 0, 0)),    # one plane per step
            pl.BlockSpec(memory_space=pltpu.SMEM),           # 5x5 weights (scalars)
            pl.BlockSpec(memory_space=pltpu.SMEM),           # bias
        ],
        out_specs=pl.BlockSpec((1, H, W), lambda p: (p, 0, 0)),
        compiler_params=pltpu.CompilerParams(
            dimension_semantics=("parallel",)),              # dual-TC on v7x when P > 1
    )(x_planes, weight.reshape(KH, KW), bias)

    return out.reshape(N, C, H, W)


def _reference(x_nchw, weight, bias):
    # Pure-JAX reference (matches PyTorch Conv2d(padding=2) + tanh).
    y = jax.lax.conv_general_dilated(
        x_nchw, weight,
        window_strides=(1, 1), padding=((PAD, PAD), (PAD, PAD)),
        dimension_numbers=("NCHW", "OIHW", "NCHW"))
    return jnp.tanh(y + bias.reshape(1, 1, 1, 1))


if __name__ == "__main__":
    key = jax.random.PRNGKey(0)
    kx, kw, kb = jax.random.split(key, 3)

    # Input consistent with the module's expected input: (1, 1, 128, 128).
    x = jax.random.normal(kx, (1, 1, 128, 128), dtype=jnp.float32)

    # Deterministic Conv2d(1, 1, 5, 5) parameter init (PyTorch-style uniform
    # bounds: +/- 1/sqrt(fan_in), fan_in = 1*5*5 = 25).
    bound = 1.0 / jnp.sqrt(25.0)
    weight = jax.random.uniform(kw, (1, 1, KH, KW), jnp.float32, -bound, bound)
    bias = jax.random.uniform(kb, (1,), jnp.float32, -bound, bound)

    y = conv5x5_tanh(x, weight, bias)
    jax.block_until_ready(y)

    y_ref = _reference(x, weight, bias)
    assert jnp.allclose(y, y_ref, atol=1e-5, rtol=1e-5), "mismatch vs reference"

    print("KERNEL_OK")
</pallas_src>

<mosaic_0001>
module attributes {stable_mosaic.version = 11 : i64} {
  func.func @_conv5x5_tanh_kernel(%arg0: i32, %arg1: memref<1x128x128xf32, #tpu.memory_space<vmem>>, %arg2: memref<5x5xf32, #tpu.memory_space<smem>>, %arg3: memref<1xf32, #tpu.memory_space<smem>>, %arg4: memref<1x128x128xf32, #tpu.memory_space<vmem>>) attributes {dimension_semantics = [#tpu.dimension_semantics<parallel>], iteration_bounds = array<i64: 1>, scalar_prefetch = 0 : i64, scratch_operands = 0 : i64, tpu.core_type = #tpu.core_type<tc>, window_params = [{transform_indices = @transform_0, window_bounds = array<i64: 1, 128, 128>}, {transform_indices = @transform_1, window_bounds = array<i64: 5, 5>}, {transform_indices = @transform_2, window_bounds = array<i64: 1>}, {transform_indices = @transform_3, window_bounds = array<i64: 1, 128, 128>}]} {
    %0 = tpu.iota {dimensions = array<i32: 1>} : vector<1x128xi32>
    %cst = arith.constant 0.000000e+00 : f32
    %1 = vector.broadcast %cst : f32 to vector<8x128xf32>
    %c0 = arith.constant 0 : index
    %c0_0 = arith.constant 0 : index
    %c0_1 = arith.constant 0 : index
    %2 = vector.load %arg1[%c0, %c0_0, %c0_1] : memref<1x128x128xf32, #tpu.memory_space<vmem>>, vector<1x128x128xf32>
    %3 = vector.shape_cast %2 : vector<1x128x128xf32> to vector<128x128xf32>
    %c2_i32 = arith.constant 2 : i32
    %4 = tpu.dynamic_rotate %3 by %c2_i32 dim 1 : vector<128x128xf32>, i32 -> vector<128x128xf32>
    %c2_i32_2 = arith.constant 2 : i32
    %5 = vector.broadcast %c2_i32_2 : i32 to vector<1x128xi32>
    %6 = arith.cmpi sge, %0, %5 : vector<1x128xi32>
    %cst_3 = arith.constant 0.000000e+00 : f32
    %7 = vector.shape_cast %6 : vector<1x128xi1> to vector<1x128xi1>
    %8 = vector.broadcast %7 : vector<1x128xi1> to vector<128x128xi1>
    %9 = vector.broadcast %cst_3 : f32 to vector<128x128xf32>
    %10 = arith.select %8, %4, %9 : vector<128x128xi1>, vector<128x128xf32>
    %11 = tpu.concatenate %10, %1 in 0 : vector<128x128xf32>, vector<8x128xf32> -> vector<136x128xf32>
    %c2_i32_4 = arith.constant 2 : i32
    %12 = tpu.dynamic_rotate %11 by %c2_i32_4 dim 0 : vector<136x128xf32>, i32 -> vector<136x128xf32>
    %13 = vector.extract_strided_slice %12 {offsets = [0, 0], sizes = [128, 128], strides = [1, 1]} : vector<136x128xf32> to vector<128x128xf32>
    %c0_5 = arith.constant 0 : index
    %c0_6 = arith.constant 0 : index
    %14 = memref.load %arg2[%c0_5, %c0_6] : memref<5x5xf32, #tpu.memory_space<smem>>
    %15 = vector.broadcast %14 : f32 to vector<128x128xf32>
    %16 = arith.mulf %13, %15 : vector<128x128xf32>
    %c0_7 = arith.constant 0 : index
    %17 = memref.load %arg3[%c0_7] : memref<1xf32, #tpu.memory_space<smem>>
    %18 = vector.broadcast %17 : f32 to vector<128x128xf32>
    %19 = arith.addf %16, %18 : vector<128x128xf32>
    %c1_i32 = arith.constant 1 : i32
    %20 = tpu.dynamic_rotate %11 by %c1_i32 dim 0 : vector<136x128xf32>, i32 -> vector<136x128xf32>
    %21 = vector.extract_strided_slice %20 {offsets = [0, 0], sizes = [128, 128], strides = [1, 1]} : vector<136x128xf32> to vector<128x128xf32>
    %c1 = arith.constant 1 : index
    %c0_8 = arith.constant 0 : index
    %22 = memref.load %arg2[%c1, %c0_8] : memref<5x5xf32, #tpu.memory_space<smem>>
    %23 = vector.broadcast %22 : f32 to vector<128x128xf32>
    %24 = arith.mulf %21, %23 : vector<128x128xf32>
    %25 = arith.addf %19, %24 : vector<128x128xf32>
    %26 = vector.extract_strided_slice %11 {offsets = [0, 0], sizes = [128, 128], strides = [1, 1]} : vector<136x128xf32> to vector<128x128xf32>
    %c2 = arith.constant 2 : index
    %c0_9 = arith.constant 0 : index
    %27 = memref.load %arg2[%c2, %c0_9] : memref<5x5xf32, #tpu.memory_space<smem>>
    %28 = vector.broadcast %27 : f32 to vector<128x128xf32>
    %29 = arith.mulf %26, %28 : vector<128x128xf32>
    %30 = arith.addf %25, %29 : vector<128x128xf32>
    %c135_i32 = arith.constant 135 : i32
    %31 = tpu.dynamic_rotate %11 by %c135_i32 dim 0 : vector<136x128xf32>, i32 -> vector<136x128xf32>
    %32 = vector.extract_strided_slice %31 {offsets = [0, 0], sizes = [128, 128], strides = [1, 1]} : vector<136x128xf32> to vector<128x128xf32>
    %c3 = arith.constant 3 : index
    %c0_10 = arith.constant 0 : index
    %33 = memref.load %arg2[%c3, %c0_10] : memref<5x5xf32, #tpu.memory_space<smem>>
    %34 = vector.broadcast %33 : f32 to vector<128x128xf32>
    %35 = arith.mulf %32, %34 : vector<128x128xf32>
    %36 = arith.addf %30, %35 : vector<128x128xf32>
    %c134_i32 = arith.constant 134 : i32
    %37 = tpu.dynamic_rotate %11 by %c134_i32 dim 0 : vector<136x128xf32>, i32 -> vector<136x128xf32>
    %38 = vector.extract_strided_slice %37 {offsets = [0, 0], sizes = [128, 128], strides = [1, 1]} : vector<136x128xf32> to vector<128x128xf32>
    %c4 = arith.constant 4 : index
    %c0_11 = arith.constant 0 : index
    %39 = memref.load %arg2[%c4, %c0_11] : memref<5x5xf32, #tpu.memory_space<smem>>
    %40 = vector.broadcast %39 : f32 to vector<128x128xf32>
    %41 = arith.mulf %38, %40 : vector<128x128xf32>
    %42 = arith.addf %36, %41 : vector<128x128xf32>
    %c0_12 = arith.constant 0 : index
    %c0_13 = arith.constant 0 : index
    %c0_14 = arith.constant 0 : index
    %43 = vector.load %arg1[%c0_12, %c0_13, %c0_14] : memref<1x128x128xf32, #tpu.memory_space<vmem>>, vector<1x128x128xf32>
    %44 = vector.shape_cast %43 : vector<1x128x128xf32> to vector<128x128xf32>
    %c1_i32_15 = arith.constant 1 : i32
    %45 = tpu.dynamic_rotate %44 by %c1_i32_15 dim 1 : vector<128x128xf32>, i32 -> vector<128x128xf32>
    %c1_i32_16 = arith.constant 1 : i32
    %46 = vector.broadcast %c1_i32_16 : i32 to vector<1x128xi32>
    %47 = arith.cmpi sge, %0, %46 : vector<1x128xi32>
    %cst_17 = arith.constant 0.000000e+00 : f32
    %48 = vector.shape_cast %47 : vector<1x128xi1> to vector<1x128xi1>
    %49 = vector.broadcast %48 : vector<1x128xi1> to vector<128x128xi1>
    %50 = vector.broadcast %cst_17 : f32 to vector<128x128xf32>
    %51 = arith.select %49, %45, %50 : vector<128x128xi1>, vector<128x128xf32>
    %52 = tpu.concatenate %51, %1 in 0 : vector<128x128xf32>, vector<8x128xf32> -> vector<136x128xf32>
    %c2_i32_18 = arith.constant 2 : i32
    %53 = tpu.dynamic_rotate %52 by %c2_i32_18 dim 0 : vector<136x128xf32>, i32 -> vector<136x128xf32>
    %54 = vector.extract_strided_slice %53 {offsets = [0, 0], sizes = [128, 128], strides = [1, 1]} : vector<136x128xf32> to vector<128x128xf32>
    %c0_19 = arith.constant 0 : index
    %c1_20 = arith.constant 1 : index
    %55 = memref.load %arg2[%c0_19, %c1_20] : memref<5x5xf32, #tpu.memory_space<smem>>
    %56 = vector.broadcast %55 : f32 to vector<128x128xf32>
    %57 = arith.mulf %54, %56 : vector<128x128xf32>
    %58 = arith.addf %42, %57 : vector<128x128xf32>
    %c1_i32_21 = arith.constant 1 : i32
    %59 = tpu.dynamic_rotate %52 by %c1_i32_21 dim 0 : vector<136x128xf32>, i32 -> vector<136x128xf32>
    %60 = vector.extract_strided_slice %59 {offsets = [0, 0], sizes = [128, 128], strides = [1, 1]} : vector<136x128xf32> to vector<128x128xf32>
    %c1_22 = arith.constant 1 : index
    %c1_23 = arith.constant 1 : index
    %61 = memref.load %arg2[%c1_22, %c1_23] : memref<5x5xf32, #tpu.memory_space<smem>>
    %62 = vector.broadcast %61 : f32 to vector<128x128xf32>
    %63 = arith.mulf %60, %62 : vector<128x128xf32>
    %64 = arith.addf %58, %63 : vector<128x128xf32>
    %65 = vector.extract_strided_slice %52 {offsets = [0, 0], sizes = [128, 128], strides = [1, 1]} : vector<136x128xf32> to vector<128x128xf32>
    %c2_24 = arith.constant 2 : index
    %c1_25 = arith.constant 1 : index
    %66 = memref.load %arg2[%c2_24, %c1_25] : memref<5x5xf32, #tpu.memory_space<smem>>
    %67 = vector.broadcast %66 : f32 to vector<128x128xf32>
    %68 = arith.mulf %65, %67 : vector<128x128xf32>
    %69 = arith.addf %64, %68 : vector<128x128xf32>
    %c135_i32_26 = arith.constant 135 : i32
    %70 = tpu.dynamic_rotate %52 by %c135_i32_26 dim 0 : vector<136x128xf32>, i32 -> vector<136x128xf32>
    %71 = vector.extract_strided_slice %70 {offsets = [0, 0], sizes = [128, 128], strides = [1, 1]} : vector<136x128xf32> to vector<128x128xf32>
    %c3_27 = arith.constant 3 : index
    %c1_28 = arith.constant 1 : index
    %72 = memref.load %arg2[%c3_27, %c1_28] : memref<5x5xf32, #tpu.memory_space<smem>>
    %73 = vector.broadcast %72 : f32 to vector<128x128xf32>
    %74 = arith.mulf %71, %73 : vector<128x128xf32>
    %75 = arith.addf %69, %74 : vector<128x128xf32>
    %c134_i32_29 = arith.constant 134 : i32
    %76 = tpu.dynamic_rotate %52 by %c134_i32_29 dim 0 : vector<136x128xf32>, i32 -> vector<136x128xf32>
    %77 = vector.extract_strided_slice %76 {offsets = [0, 0], sizes = [128, 128], strides = [1, 1]} : vector<136x128xf32> to vector<128x128xf32>
    %c4_30 = arith.constant 4 : index
    %c1_31 = arith.constant 1 : index
    %78 = memref.load %arg2[%c4_30, %c1_31] : memref<5x5xf32, #tpu.memory_space<smem>>
    %79 = vector.broadcast %78 : f32 to vector<128x128xf32>
    %80 = arith.mulf %77, %79 : vector<128x128xf32>
    %81 = arith.addf %75, %80 : vector<128x128xf32>
    %c0_32 = arith.constant 0 : index
    %c0_33 = arith.constant 0 : index
    %c0_34 = arith.constant 0 : index
    %82 = vector.load %arg1[%c0_32, %c0_33, %c0_34] : memref<1x128x128xf32, #tpu.memory_space<vmem>>, vector<1x128x128xf32>
    %83 = vector.shape_cast %82 : vector<1x128x128xf32> to vector<128x128xf32>
    %84 = tpu.concatenate %83, %1 in 0 : vector<128x128xf32>, vector<8x128xf32> -> vector<136x128xf32>
    %c2_i32_35 = arith.constant 2 : i32
    %85 = tpu.dynamic_rotate %84 by %c2_i32_35 dim 0 : vector<136x128xf32>, i32 -> vector<136x128xf32>
    %86 = vector.extract_strided_slice %85 {offsets = [0, 0], sizes = [128, 128], strides = [1, 1]} : vector<136x128xf32> to vector<128x128xf32>
    %c0_36 = arith.constant 0 : index
    %c2_37 = arith.constant 2 : index
    %87 = memref.load %arg2[%c0_36, %c2_37] : memref<5x5xf32, #tpu.memory_space<smem>>
    %88 = vector.broadcast %87 : f32 to vector<128x128xf32>
    %89 = arith.mulf %86, %88 : vector<128x128xf32>
    %90 = arith.addf %81, %89 : vector<128x128xf32>
    %c1_i32_38 = arith.constant 1 : i32
    %91 = tpu.dynamic_rotate %84 by %c1_i32_38 dim 0 : vector<136x128xf32>, i32 -> vector<136x128xf32>
    %92 = vector.extract_strided_slice %91 {offsets = [0, 0], sizes = [128, 128], strides = [1, 1]} : vector<136x128xf32> to vector<128x128xf32>
    %c1_39 = arith.constant 1 : index
    %c2_40 = arith.constant 2 : index
    %93 = memref.load %arg2[%c1_39, %c2_40] : memref<5x5xf32, #tpu.memory_space<smem>>
    %94 = vector.broadcast %93 : f32 to vector<128x128xf32>
    %95 = arith.mulf %92, %94 : vector<128x128xf32>
    %96 = arith.addf %90, %95 : vector<128x128xf32>
    %97 = vector.extract_strided_slice %84 {offsets = [0, 0], sizes = [128, 128], strides = [1, 1]} : vector<136x128xf32> to vector<128x128xf32>
    %c2_41 = arith.constant 2 : index
    %c2_42 = arith.constant 2 : index
    %98 = memref.load %arg2[%c2_41, %c2_42] : memref<5x5xf32, #tpu.memory_space<smem>>
    %99 = vector.broadcast %98 : f32 to vector<128x128xf32>
    %100 = arith.mulf %97, %99 : vector<128x128xf32>
    %101 = arith.addf %96, %100 : vector<128x128xf32>
    %c135_i32_43 = arith.constant 135 : i32
    %102 = tpu.dynamic_rotate %84 by %c135_i32_43 dim 0 : vector<136x128xf32>, i32 -> vector<136x128xf32>
    %103 = vector.extract_strided_slice %102 {offsets = [0, 0], sizes = [128, 128], strides = [1, 1]} : vector<136x128xf32> to vector<128x128xf32>
    %c3_44 = arith.constant 3 : index
    %c2_45 = arith.constant 2 : index
    %104 = memref.load %arg2[%c3_44, %c2_45] : memref<5x5xf32, #tpu.memory_space<smem>>
    %105 = vector.broadcast %104 : f32 to vector<128x128xf32>
    %106 = arith.mulf %103, %105 : vector<128x128xf32>
    %107 = arith.addf %101, %106 : vector<128x128xf32>
    %c134_i32_46 = arith.constant 134 : i32
    %108 = tpu.dynamic_rotate %84 by %c134_i32_46 dim 0 : vector<136x128xf32>, i32 -> vector<136x128xf32>
    %109 = vector.extract_strided_slice %108 {offsets = [0, 0], sizes = [128, 128], strides = [1, 1]} : vector<136x128xf32> to vector<128x128xf32>
    %c4_47 = arith.constant 4 : index
    %c2_48 = arith.constant 2 : index
    %110 = memref.load %arg2[%c4_47, %c2_48] : memref<5x5xf32, #tpu.memory_space<smem>>
    %111 = vector.broadcast %110 : f32 to vector<128x128xf32>
    %112 = arith.mulf %109, %111 : vector<128x128xf32>
    %113 = arith.addf %107, %112 : vector<128x128xf32>
    %c0_49 = arith.constant 0 : index
    %c0_50 = arith.constant 0 : index
    %c0_51 = arith.constant 0 : index
    %114 = vector.load %arg1[%c0_49, %c0_50, %c0_51] : memref<1x128x128xf32, #tpu.memory_space<vmem>>, vector<1x128x128xf32>
    %115 = vector.shape_cast %114 : vector<1x128x128xf32> to vector<128x128xf32>
    %c127_i32 = arith.constant 127 : i32
    %116 = tpu.dynamic_rotate %115 by %c127_i32 dim 1 : vector<128x128xf32>, i32 -> vector<128x128xf32>
    %c127_i32_52 = arith.constant 127 : i32
    %117 = vector.broadcast %c127_i32_52 : i32 to vector<1x128xi32>
    %118 = arith.cmpi slt, %0, %117 : vector<1x128xi32>
    %cst_53 = arith.constant 0.000000e+00 : f32
    %119 = vector.shape_cast %118 : vector<1x128xi1> to vector<1x128xi1>
    %120 = vector.broadcast %119 : vector<1x128xi1> to vector<128x128xi1>
    %121 = vector.broadcast %cst_53 : f32 to vector<128x128xf32>
    %122 = arith.select %120, %116, %121 : vector<128x128xi1>, vector<128x128xf32>
    %123 = tpu.concatenate %122, %1 in 0 : vector<128x128xf32>, vector<8x128xf32> -> vector<136x128xf32>
    %c2_i32_54 = arith.constant 2 : i32
    %124 = tpu.dynamic_rotate %123 by %c2_i32_54 dim 0 : vector<136x128xf32>, i32 -> vector<136x128xf32>
    %125 = vector.extract_strided_slice %124 {offsets = [0, 0], sizes = [128, 128], strides = [1, 1]} : vector<136x128xf32> to vector<128x128xf32>
    %c0_55 = arith.constant 0 : index
    %c3_56 = arith.constant 3 : index
    %126 = memref.load %arg2[%c0_55, %c3_56] : memref<5x5xf32, #tpu.memory_space<smem>>
    %127 = vector.broadcast %126 : f32 to vector<128x128xf32>
    %128 = arith.mulf %125, %127 : vector<128x128xf32>
    %129 = arith.addf %113, %128 : vector<128x128xf32>
    %c1_i32_57 = arith.constant 1 : i32
    %130 = tpu.dynamic_rotate %123 by %c1_i32_57 dim 0 : vector<136x128xf32>, i32 -> vector<136x128xf32>
    %131 = vector.extract_strided_slice %130 {offsets = [0, 0], sizes = [128, 128], strides = [1, 1]} : vector<136x128xf32> to vector<128x128xf32>
    %c1_58 = arith.constant 1 : index
    %c3_59 = arith.constant 3 : index
    %132 = memref.load %arg2[%c1_58, %c3_59] : memref<5x5xf32, #tpu.memory_space<smem>>
    %133 = vector.broadcast %132 : f32 to vector<128x128xf32>
    %134 = arith.mulf %131, %133 : vector<128x128xf32>
    %135 = arith.addf %129, %134 : vector<128x128xf32>
    %136 = vector.extract_strided_slice %123 {offsets = [0, 0], sizes = [128, 128], strides = [1, 1]} : vector<136x128xf32> to vector<128x128xf32>
    %c2_60 = arith.constant 2 : index
    %c3_61 = arith.constant 3 : index
    %137 = memref.load %arg2[%c2_60, %c3_61] : memref<5x5xf32, #tpu.memory_space<smem>>
    %138 = vector.broadcast %137 : f32 to vector<128x128xf32>
    %139 = arith.mulf %136, %138 : vector<128x128xf32>
    %140 = arith.addf %135, %139 : vector<128x128xf32>
    %c135_i32_62 = arith.constant 135 : i32
    %141 = tpu.dynamic_rotate %123 by %c135_i32_62 dim 0 : vector<136x128xf32>, i32 -> vector<136x128xf32>
    %142 = vector.extract_strided_slice %141 {offsets = [0, 0], sizes = [128, 128], strides = [1, 1]} : vector<136x128xf32> to vector<128x128xf32>
    %c3_63 = arith.constant 3 : index
    %c3_64 = arith.constant 3 : index
    %143 = memref.load %arg2[%c3_63, %c3_64] : memref<5x5xf32, #tpu.memory_space<smem>>
    %144 = vector.broadcast %143 : f32 to vector<128x128xf32>
    %145 = arith.mulf %142, %144 : vector<128x128xf32>
    %146 = arith.addf %140, %145 : vector<128x128xf32>
    %c134_i32_65 = arith.constant 134 : i32
    %147 = tpu.dynamic_rotate %123 by %c134_i32_65 dim 0 : vector<136x128xf32>, i32 -> vector<136x128xf32>
    %148 = vector.extract_strided_slice %147 {offsets = [0, 0], sizes = [128, 128], strides = [1, 1]} : vector<136x128xf32> to vector<128x128xf32>
    %c4_66 = arith.constant 4 : index
    %c3_67 = arith.constant 3 : index
    %149 = memref.load %arg2[%c4_66, %c3_67] : memref<5x5xf32, #tpu.memory_space<smem>>
    %150 = vector.broadcast %149 : f32 to vector<128x128xf32>
    %151 = arith.mulf %148, %150 : vector<128x128xf32>
    %152 = arith.addf %146, %151 : vector<128x128xf32>
    %c0_68 = arith.constant 0 : index
    %c0_69 = arith.constant 0 : index
    %c0_70 = arith.constant 0 : index
    %153 = vector.load %arg1[%c0_68, %c0_69, %c0_70] : memref<1x128x128xf32, #tpu.memory_space<vmem>>, vector<1x128x128xf32>
    %154 = vector.shape_cast %153 : vector<1x128x128xf32> to vector<128x128xf32>
    %c126_i32 = arith.constant 126 : i32
    %155 = tpu.dynamic_rotate %154 by %c126_i32 dim 1 : vector<128x128xf32>, i32 -> vector<128x128xf32>
    %c126_i32_71 = arith.constant 126 : i32
    %156 = vector.broadcast %c126_i32_71 : i32 to vector<1x128xi32>
    %157 = arith.cmpi slt, %0, %156 : vector<1x128xi32>
    %cst_72 = arith.constant 0.000000e+00 : f32
    %158 = vector.shape_cast %157 : vector<1x128xi1> to vector<1x128xi1>
    %159 = vector.broadcast %158 : vector<1x128xi1> to vector<128x128xi1>
    %160 = vector.broadcast %cst_72 : f32 to vector<128x128xf32>
    %161 = arith.select %159, %155, %160 : vector<128x128xi1>, vector<128x128xf32>
    %162 = tpu.concatenate %161, %1 in 0 : vector<128x128xf32>, vector<8x128xf32> -> vector<136x128xf32>
    %c2_i32_73 = arith.constant 2 : i32
    %163 = tpu.dynamic_rotate %162 by %c2_i32_73 dim 0 : vector<136x128xf32>, i32 -> vector<136x128xf32>
    %164 = vector.extract_strided_slice %163 {offsets = [0, 0], sizes = [128, 128], strides = [1, 1]} : vector<136x128xf32> to vector<128x128xf32>
    %c0_74 = arith.constant 0 : index
    %c4_75 = arith.constant 4 : index
    %165 = memref.load %arg2[%c0_74, %c4_75] : memref<5x5xf32, #tpu.memory_space<smem>>
    %166 = vector.broadcast %165 : f32 to vector<128x128xf32>
    %167 = arith.mulf %164, %166 : vector<128x128xf32>
    %168 = arith.addf %152, %167 : vector<128x128xf32>
    %c1_i32_76 = arith.constant 1 : i32
    %169 = tpu.dynamic_rotate %162 by %c1_i32_76 dim 0 : vector<136x128xf32>, i32 -> vector<136x128xf32>
    %170 = vector.extract_strided_slice %169 {offsets = [0, 0], sizes = [128, 128], strides = [1, 1]} : vector<136x128xf32> to vector<128x128xf32>
    %c1_77 = arith.constant 1 : index
    %c4_78 = arith.constant 4 : index
    %171 = memref.load %arg2[%c1_77, %c4_78] : memref<5x5xf32, #tpu.memory_space<smem>>
    %172 = vector.broadcast %171 : f32 to vector<128x128xf32>
    %173 = arith.mulf %170, %172 : vector<128x128xf32>
    %174 = arith.addf %168, %173 : vector<128x128xf32>
    %175 = vector.extract_strided_slice %162 {offsets = [0, 0], sizes = [128, 128], strides = [1, 1]} : vector<136x128xf32> to vector<128x128xf32>
    %c2_79 = arith.constant 2 : index
    %c4_80 = arith.constant 4 : index
    %176 = memref.load %arg2[%c2_79, %c4_80] : memref<5x5xf32, #tpu.memory_space<smem>>
    %177 = vector.broadcast %176 : f32 to vector<128x128xf32>
    %178 = arith.mulf %175, %177 : vector<128x128xf32>
    %179 = arith.addf %174, %178 : vector<128x128xf32>
    %c135_i32_81 = arith.constant 135 : i32
    %180 = tpu.dynamic_rotate %162 by %c135_i32_81 dim 0 : vector<136x128xf32>, i32 -> vector<136x128xf32>
    %181 = vector.extract_strided_slice %180 {offsets = [0, 0], sizes = [128, 128], strides = [1, 1]} : vector<136x128xf32> to vector<128x128xf32>
    %c3_82 = arith.constant 3 : index
    %c4_83 = arith.constant 4 : index
    %182 = memref.load %arg2[%c3_82, %c4_83] : memref<5x5xf32, #tpu.memory_space<smem>>
    %183 = vector.broadcast %182 : f32 to vector<128x128xf32>
    %184 = arith.mulf %181, %183 : vector<128x128xf32>
    %185 = arith.addf %179, %184 : vector<128x128xf32>
    %c134_i32_84 = arith.constant 134 : i32
    %186 = tpu.dynamic_rotate %162 by %c134_i32_84 dim 0 : vector<136x128xf32>, i32 -> vector<136x128xf32>
    %187 = vector.extract_strided_slice %186 {offsets = [0, 0], sizes = [128, 128], strides = [1, 1]} : vector<136x128xf32> to vector<128x128xf32>
    %c4_85 = arith.constant 4 : index
    %c4_86 = arith.constant 4 : index
    %188 = memref.load %arg2[%c4_85, %c4_86] : memref<5x5xf32, #tpu.memory_space<smem>>
    %189 = vector.broadcast %188 : f32 to vector<128x128xf32>
    %190 = arith.mulf %187, %189 : vector<128x128xf32>
    %191 = arith.addf %185, %190 : vector<128x128xf32>
    %192 = math.tanh %191 : vector<128x128xf32>
    %c0_87 = arith.constant 0 : index
    %c0_88 = arith.constant 0 : index
    %c0_89 = arith.constant 0 : index
    %193 = vector.load %arg4[%c0_87, %c0_88, %c0_89] : memref<1x128x128xf32, #tpu.memory_space<vmem>>, vector<1x128x128xf32>
    %194 = vector.shape_cast %193 : vector<1x128x128xf32> to vector<128x128xf32>
    %195 = vector.shape_cast %192 : vector<128x128xf32> to vector<1x128x128xf32>
    tpu.vector_store %arg4[%c0_87, %c0_88, %c0_89], %195 {strides = array<i32>} : memref<1x128x128xf32, #tpu.memory_space<vmem>>, vector<1x128x128xf32>,
    return
  }
  func.func @transform_0(%arg0: i32) -> (i32, i32, i32) {
    %c0_i32 = arith.constant 0 : i32
    %c0_i32_0 = arith.constant 0 : i32
    %c0_i32_1 = arith.constant 0 : i32
    return %arg0, %c0_i32, %c0_i32_0 : i32, i32, i32
  }
  func.func @transform_1(%arg0: i32) -> (i32, i32) {
    %c0_i32 = arith.constant 0 : i32
    %c0_i32_0 = arith.constant 0 : i32
    %c0_i32_1 = arith.constant 0 : i32
    return %c0_i32, %c0_i32_0 : i32, i32
  }
  func.func @transform_2(%arg0: i32) -> i32 {
    %c0_i32 = arith.constant 0 : i32
    %c0_i32_0 = arith.constant 0 : i32
    return %c0_i32 : i32
  }
  func.func @transform_3(%arg0: i32) -> (i32, i32, i32) {
    %c0_i32 = arith.constant 0 : i32
    %c0_i32_0 = arith.constant 0 : i32
    %c0_i32_1 = arith.constant 0 : i32
    return %arg0, %c0_i32, %c0_i32_0 : i32, i32, i32
  }
}

</mosaic_0001>

<bundles_post_ra>
// kernel: conv5x5_tanh.1
= control target key start
LH: loop header
LB: loop body
LE: loop exit
PB: predicated region body
PF: predicated region fallthrough
CT: control target
= control target key end

     0   :  { %9 = vsyncpa [#allocation4], 0  ;;  %s4485_s0 = inlined_call_operand.hbm [shape: f32[1,128,128], index: 0, kind: input, shape index: {}]   ;;  %s4486_s1 = inlined_call_operand.vmem [shape: f32[5,5], index: 1, kind: input, shape index: {}]   ;;  %s4487_s2 = inlined_call_operand.<no memory space> [shape: f32[1], index: 2, kind: input, shape index: {}]   ;;  %s4488_s3 = inlined_call_operand.hbm [shape: f32[1,128,128], index: 3, kind: output, shape index: {}]  }
   0x1   :  { %10 = vsyncpa [#allocation6], 0 }
   0x2   :  { %11 = vsyncpa [#allocation5], 0  ;;  %s1956_s12 = smov [#allocation3]   ;;  %s30_s16 = sshll.u32 %s4486_s1, 4  ;;  %s31_s16 = int_to_ptr.vmem [resolvable:$true] %s30_s16 }
   0x3   :  { %s17_s13 = sshll.u32 %s1956_s12, 4  ;;  %s1894_s19 = scalar_lea.hbm %s4485_s0, 2048  ;;  %s18_s13 = int_to_ptr.vmem [resolvable:$true] %s17_s13 }
   0x4   :  { %p1895_p0 = scmp.ne.s32.totalorder %s4485_s0, %s1894_s19  ;;  %p1898_p1 = scmp.lt.u32.totalorder %s1894_s19, %s4485_s0 }
   0x6   :  { %p1900_p2 = pnand %p1898_p1, %p1895_p0 }
   0x8   :  { %1903 = shalt.err (!%p1900_p2)
}
   0x9   :  { %s1904_s24 = scalar_lea.vmem %s18_s13, 2048  ;;  %p1909_p4 = scmp.lt.s32.totalorder %s18_s13, %s18_s13 }
   0xa   :  { %p1905_p3 = scmp.ne.s32.totalorder %s18_s13, %s1904_s24  ;;  %p1910_p5 = scmp.lt.s32.totalorder %s1904_s24, %s1904_s24 }
   0xc   :  { %p1911_p6 = por %p1910_p5, %p1909_p4 }
   0xe   :  { %p1912_p7 = pnand %p1911_p6, %p1905_p3 }
  0x10   :  { %1915 = shalt.err (!%p1912_p7)
}
  0x11   :  { %s1957_s1 = smov 128   ;;  %s1958_s25 = smov 8  }
  0x12   :  { %23 = dma.hbm_to_vmem [thread:$0]  %s4485_s0, 2048, %s18_s13, [#allocation4], %s1957_s1, %s1957_s1, %s1958_s25  }
  0x13   :  { %s1916_s28 = scalar_lea.vmem %s31_s16, 128  ;;  %p1921_p9 = scmp.lt.s32.totalorder %s31_s16, %s31_s16 }
  0x14   :  { %p1917_p8 = scmp.ne.s32.totalorder %s31_s16, %s1916_s28  ;;  %p1922_p10 = scmp.lt.s32.totalorder %s1916_s28, %s1916_s28 }
  0x16   :  { %p1923_p11 = por %p1922_p10, %p1921_p9 }
  0x18   :  { %p1924_p12 = pnand %p1923_p11, %p1917_p8 }
  0x1a   :  { %1927 = shalt.err (!%p1924_p12)
}
  0x1b   :  { %s1959_s29 = smov [#allocation7]  }
  0x1c   :  { %33 = dma.vmem_to_smem %s31_s16, 128, %s1959_s29, [#allocation6]  }
  0x1d   :  { %1950 = dma.done.wait [#allocation4], 2048  }
  0x1e   :  { %1951 = vsyncadd [#allocation4], 4294965248 }
  0x1f   :  { %1952 = dma.done.wait [#allocation6], 128  }
  0x20   :  { %1953 = vsyncadd [#allocation6], 4294967168 }
  0x21   :  { %42 = sfence }
  0x22   :  { %v2003_v0 = vld [vmem:[#allocation3 + $0x10] sm:$0xff]  ;;  %v2005_v1 = vld [vmem:[#allocation3] sm:$0xff]  ;;  %s1960_s0 = smov 2   ;;  %v2009_v2 = vld [vmem:[#allocation3 + $0x18] sm:$0xff]  ;;  %s1961_s30 = smov 1   ;;  %v43_v16 = vlaneseq  ;;  %v2102_v19 = vstv %s4487_s2 }
  0x23   :  { %65 = vrot.lane.b32.xlu1 %v2003_v0, %s1960_s0  ;;  %61 = vrot.lane.b32.xlu0 %v2005_v1, %s1960_s0  ;;  %v2011_v3 = vld [vmem:[#allocation3 + $0x8] sm:$0xff]  ;;  %v2017_v5 = vld [vmem:[#allocation3 + $0x20] sm:$0xff]  ;;  %v2021_v6 = vld [vmem:[#allocation3 + $0x38] sm:$0xff]  ;;  %s1962_s4 = smov 127   ;;  %s1814_s5 = sld [smem:[#allocation7 + $0x100]]  ;;  %v767_v20 = vrot.slane %v2005_v1, 6 }
  0x24   :  { %v2015_v4 = vld [vmem:[#allocation3 + $0x28] sm:$0xff]  ;;  %v2023_v7 = vld [vmem:[#allocation3 + $0x30] sm:$0xff]  ;;  %v2029_v9 = vld [vmem:[#allocation3 + $0x40] sm:$0xff]  ;;  %s147_s6 = sld [smem:[#allocation7]]  ;;  %s1963_s9 = smov 126   ;;  %v2091_v17 = vand.u32 127, %v43_v16 }
  0x25   :  { %v2027_v8 = vld [vmem:[#allocation3 + $0x48] sm:$0xff]  ;;  %4528 = vst [vmem:[#allocation12_spill] sm:$0xff] %v2029_v9  ;;  %v2033_v10 = vld [vmem:[#allocation3 + $0x58] sm:$0xff]  ;;  %v2035_v11 = vld [vmem:[#allocation3 + $0x50] sm:$0xff]  ;;  %s1813_s7 = sld [smem:[#allocation7 + $0x80]]  ;;  %s1819_s11 = sld [smem:[#allocation7 + $0x101]] }
  0x26   :  { %v2039_v12 = vld [vmem:[#allocation3 + $0x68] sm:$0xff]  ;;  %v2041_v13 = vld [vmem:[#allocation3 + $0x60] sm:$0xff]  ;;  %v2045_v14 = vld [vmem:[#allocation3 + $0x78] sm:$0xff]  ;;  %s1815_s8 = sld [smem:[#allocation7 + $0x180]]  ;;  %s1822_s12 = sld [smem:[#allocation7 + $0x2]]  ;;  %v2093_v18 = vshrl.u32 %v43_v16, 7 }
  0x27   :  { %67 = vrot.lane.b32.xlu1 %v2009_v2, %s1960_s0  ;;  %63 = vrot.lane.b32.xlu0 %v2011_v3, %s1960_s0  ;;  %v2047_v15 = vld [vmem:[#allocation3 + $0x70] sm:$0xff]  ;;  %s1816_s10 = sld [smem:[#allocation7 + $0x200]]  ;;  %s1823_s13 = sld [smem:[#allocation7 + $0x82]]  ;;  %v833_v21 = vrot.slane %v2005_v1, 7  ;;  %v768_v25 = vrot.slane %v2011_v3, 6  ;;  %vm93_vm0 = vcmp.ge.s32.totalorder %v2091_v17, 2 }
  0x28   :  { %s2095_s14 = sld [smem:[#allocation7 + $0x1]]  ;;  %vm130_vm1 = vcmp.lt.s32.totalorder %v2093_v18, 2  ;;  %vm199_vm2 = vcmp.lt.s32.totalorder %v2093_v18, 1  ;;  %v769_v31 = vrot.slane %v2003_v0, 6  ;;  %v834_v34 = vrot.slane %v2011_v3, 7  ;;  %s3242_s19 = sld [smem:[#allocation7 + $0x102]] }
  0x29   :  { %s2097_s15 = sld [smem:[#allocation7 + $0x81]]  ;;  %v2106_v22 = vstv %s1814_s5  ;;  %v798_v32 = vsel %vm130_vm1, 0.0, %v767_v20  ;;  %v864_v33 = vsel %vm199_vm2, 0.0, %v833_v21  ;;  %v835_v35 = vrot.slane %v2003_v0, 7  ;;  %s3256_s20 = sld [smem:[#allocation7 + $0x103]] }
  0x2a   :  { %v2108_v23 = vstv %s147_s6  ;;  %s2124_s2 = sld [smem:[#allocation7 + $0x181]]  ;;  %v797_v36 = vsel %vm130_vm1, %v767_v20, %v768_v25  ;;  %v770_v37 = vrot.slane %v2009_v2, 6  ;;  %v771_v38 = vrot.slane %v2017_v5, 6  ;;  %s3265_s21 = sld [smem:[#allocation7 + $0x182]] }
  0x2b   :  { %71 = vrot.lane.b32.xlu1 %v2015_v4, %s1960_s0  ;;  %69 = vrot.lane.b32.xlu0 %v2017_v5, %s1960_s0  ;;  %v2110_v24 = vstv %s1813_s7  ;;  %v2126_v28 = vstv %s1819_s11  ;;  %v836_v39 = vrot.slane %v2009_v2, 7  ;;  %s2154_s18 = sld [smem:[#allocation7 + $0x201]]  ;;  %v837_v42 = vrot.slane %v2017_v5, 7  ;;  %s3268_s22 = sld [smem:[#allocation7 + $0x202]] }
  0x2c   :  { %v2120_v26 = vstv %s1815_s8  ;;  %v2128_v29 = vstv %s1822_s12  ;;  %v772_v43 = vrot.slane %v2015_v4, 6  ;;  %v796_v44 = vsel %vm130_vm1, %v768_v25, %v769_v31  ;;  %s3292_s23 = sld [smem:[#allocation7 + $0x3]]  ;;  %s3967_s28 = sld [smem:[#allocation7 + $0x104]] }
  0x2d   :  { %v2122_v27 = vstv %s1816_s10  ;;  %4529 = vst [vmem:[#allocation13_spill] sm:$0xff] %v2128_v29  ;;  %v2130_v30 = vstv %s1823_s13  ;;  %v4490_v45 = vrot.slane %v2023_v7, 6  ;;  %v838_v46 = vrot.slane %v2015_v4, 7  ;;  %s3318_s24 = sld [smem:[#allocation7 + $0x83]]  ;;  %s3974_s29 = sld [smem:[#allocation7 + $0x4]] }
  0x2e   :  { %4530 = vst [vmem:[#allocation14_spill] sm:$0xff] %v2130_v30  ;;  %v2149_v40 = vstv %s2095_s14  ;;  %v4489_v47 = vrot.slane %v2023_v7, 7  ;;  %v2164_v48 = vmul.f32 %v2128_v29, %v798_v32  ;;  %v2167_v49 = vmul.f32 %v2130_v30, %v864_v33  ;;  %s3328_s26 = sld [smem:[#allocation7 + $0x183]]  ;;  %s1964_s5 = smov [#allocation8]  }
  0x2f   :  { %75 = vrot.lane.b32.xlu1 %v2021_v6, %s1960_s0  ;;  %73 = vrot.lane.b32.xlu0 %v2023_v7, %s1960_s0  ;;  %v2152_v41 = vstv %s2097_s15  ;;  %v2170_v50 = vmul.f32 %v2128_v29, %v797_v36  ;;  %v863_v51 = vsel %vm199_vm2, %v833_v21, %v834_v34  ;;  %v862_v52 = vsel %vm199_vm2, %v834_v34, %v835_v35  ;;  %s3336_s27 = sld [smem:[#allocation7 + $0x203]]  ;;  %s1800_s6 = sshll.u32 %s1964_s5, 4  ;;  %s1801_s6 = int_to_ptr.vmem [resolvable:$true] %s1800_s6 }
  0x30   :  { %v794_v53 = vsel %vm130_vm1, %v770_v37, %v771_v38  ;;  %v795_v54 = vsel %vm130_vm1, %v769_v31, %v770_v37  ;;  %v861_v55 = vsel %vm199_vm2, %v835_v35, %v836_v39  ;;  %v2187_v56 = vstv %s2124_s2  ;;  %s1928_s7 = scalar_lea.vmem %s1801_s6, 2048  ;;  %p1933_p0 = scmp.lt.s32.totalorder %s1801_s6, %s1801_s6 }
  0x31   :  { %v2190_v57 = vmul.f32 %v2128_v29, %v796_v44  ;;  %v860_v58 = vsel %vm199_vm2, %v836_v39, %v837_v42  ;;  %v793_v59 = vsel %vm130_vm1, %v771_v38, %v772_v43  ;;  %vm300_vm3 = vcmp.lt.s32.totalorder %v2093_v18, 7  ;;  %p1929_p13 = scmp.ne.s32.totalorder %s1801_s6, %s1928_s7  ;;  %p1934_p1 = scmp.lt.s32.totalorder %s1928_s7, %s1928_s7 }
  0x32   :  { %v2198_v60 = vmul.f32 %v2130_v30, %v863_v51  ;;  %v792_v61 = vsel %vm130_vm1, %v772_v43, %v4490_v45  ;;  %v858_v62 = vsel %vm199_vm2, %v838_v46, %v4489_v47  ;;  %v859_v63 = vsel %vm199_vm2, %v837_v42, %v838_v46 }
  0x33   :  { %79 = vrot.lane.b32.xlu1 %v2027_v8, %s1960_s0  ;;  %77 = vrot.lane.b32.xlu0 %v2029_v9, %s1960_s0  ;;  %vm367_vm4 = vcmp.lt.s32.totalorder %v2093_v18, 6  ;;  %v2232_v20 = vmul.f32 %v2130_v30, %v860_v58  ;;  %v2235_v21 = vmul.f32 %v2128_v29, %v793_v59  ;;  %v2242_v25 = vstv %s2154_s18  ;;  %p1935_p2 = por %p1934_p1, %p1933_p0 }
  0x34   :  { %v2245_v31 = vmul.f32 %v2128_v29, %v792_v61  ;;  %v2248_v32 = vmul.f32 %v2130_v30, %v859_v63  ;;  %v2251_v33 = vmul.f32 %v2130_v30, %v858_v62  ;;  %v4494_v36 = vrot.slane %v2029_v9, 6 }
  0x35   :  { %4533 = vst [vmem:[#allocation17_spill] sm:$0xff] %v2232_v20  ;;  %4534 = vst [vmem:[#allocation18_spill] sm:$0xff] %v2235_v21  ;;  %vm450_vm5 = vcmp.ge.s32.totalorder %v2091_v17, 1  ;;  %vm1097_vm6 = vcmp.lt.s32.totalorder %v2091_v17, 127  ;;  %vm1446_vm7 = vcmp.lt.s32.totalorder %v2091_v17, 126  ;;  %p1936_p3 = pnand %p1935_p2, %p1929_p13 }
  0x36   :  { %4535 = vst [vmem:[#allocation19_spill] sm:$0xff] %v2245_v31  ;;  %4536 = vst [vmem:[#allocation20_spill] sm:$0xff] %v2248_v32 }
  0x37   :  { %83 = vrot.lane.b32.xlu1 %v2033_v10, %s1960_s0  ;;  %81 = vrot.lane.b32.xlu0 %v2035_v11, %s1960_s0  ;;  %4537 = vst [vmem:[#allocation21_spill] sm:$0xff] %v2251_v33 }
  0x3b   :  { %87 = vrot.lane.b32.xlu1 %v2039_v12, %s1960_s0  ;;  %85 = vrot.lane.b32.xlu0 %v2041_v13, %s1960_s0 }
  0x3f   :  { %91 = vrot.lane.b32.xlu1 %v2045_v14, %s1960_s0  ;;  %89 = vrot.lane.b32.xlu0 %v2047_v15, %s1960_s0  ;;  %s3981_s0 = sld [smem:[#allocation7 + $0x84]] }
  0x43   :  { %420 = vrot.lane.b32.xlu1 %v2011_v3, %s1961_s30  ;;  %418 = vrot.lane.b32.xlu0 %v2005_v1, %s1961_s30 }
  0x47   :  { %424 = vrot.lane.b32.xlu1 %v2009_v2, %s1961_s30  ;;  %422 = vrot.lane.b32.xlu0 %v2003_v0, %s1961_s30 }
  0x4b   :  { %428 = vrot.lane.b32.xlu1 %v2015_v4, %s1961_s30  ;;  %426 = vrot.lane.b32.xlu0 %v2017_v5, %s1961_s30 }
  0x4f   :  { %432 = vrot.lane.b32.xlu1 %v2021_v6, %s1961_s30  ;;  %430 = vrot.lane.b32.xlu0 %v2023_v7, %s1961_s30 }
  0x53   :  { %436 = vrot.lane.b32.xlu1 %v2027_v8, %s1961_s30  ;;  %434 = vrot.lane.b32.xlu0 %v2029_v9, %s1961_s30 }
  0x57   :  { %440 = vrot.lane.b32.xlu1 %v2033_v10, %s1961_s30  ;;  %438 = vrot.lane.b32.xlu0 %v2035_v11, %s1961_s30 }
  0x5b   :  { %444 = vrot.lane.b32.xlu1 %v2039_v12, %s1961_s30  ;;  %442 = vrot.lane.b32.xlu0 %v2041_v13, %s1961_s30 }
  0x5f   :  { %448 = vrot.lane.b32.xlu1 %v2045_v14, %s1961_s30  ;;  %446 = vrot.lane.b32.xlu0 %v2047_v15, %s1961_s30  ;;  %s3995_s30 = sld [smem:[#allocation7 + $0x184]] }
  0x63   :  { %1067 = vrot.lane.b32.xlu1 %v2011_v3, %s1962_s4  ;;  %1065 = vrot.lane.b32.xlu0 %v2005_v1, %s1962_s4 }
  0x67   :  { %1071 = vrot.lane.b32.xlu1 %v2009_v2, %s1962_s4  ;;  %1069 = vrot.lane.b32.xlu0 %v2003_v0, %s1962_s4 }
  0x6b   :  { %1075 = vrot.lane.b32.xlu1 %v2015_v4, %s1962_s4  ;;  %1073 = vrot.lane.b32.xlu0 %v2017_v5, %s1962_s4 }
  0x6f   :  { %1079 = vrot.lane.b32.xlu1 %v2021_v6, %s1962_s4  ;;  %1077 = vrot.lane.b32.xlu0 %v2023_v7, %s1962_s4 }
  0x73   :  { %1083 = vrot.lane.b32.xlu1 %v2027_v8, %s1962_s4  ;;  %1081 = vrot.lane.b32.xlu0 %v2029_v9, %s1962_s4 }
  0x77   :  { %1087 = vrot.lane.b32.xlu1 %v2033_v10, %s1962_s4  ;;  %1085 = vrot.lane.b32.xlu0 %v2035_v11, %s1962_s4 }
  0x7b   :  { %1091 = vrot.lane.b32.xlu1 %v2039_v12, %s1962_s4  ;;  %1089 = vrot.lane.b32.xlu0 %v2041_v13, %s1962_s4 }
  0x7f   :  { %1095 = vrot.lane.b32.xlu1 %v2045_v14, %s1962_s4  ;;  %1093 = vrot.lane.b32.xlu0 %v2047_v15, %s1962_s4  ;;  %s3997_s4 = sld [smem:[#allocation7 + $0x204]] }
  0x83   :  { %1416 = vrot.lane.b32.xlu1 %v2011_v3, %s1963_s9  ;;  %1414 = vrot.lane.b32.xlu0 %v2005_v1, %s1963_s9  ;;  %v2214_v3 = vmul.f32 %v2128_v29, %v795_v54 }
  0x87   :  { %1420 = vrot.lane.b32.xlu1 %v2009_v2, %s1963_s9  ;;  %1418 = vrot.lane.b32.xlu0 %v2003_v0, %s1963_s9  ;;  %v2211_v2 = vmul.f32 %v2130_v30, %v862_v52 }
  0x89   :  { %4531 = vst [vmem:[#allocation15_spill] sm:$0xff] %v2211_v2 }
  0x8b   :  { %1424 = vrot.lane.b32.xlu1 %v2015_v4, %s1963_s9  ;;  %1422 = vrot.lane.b32.xlu0 %v2017_v5, %s1963_s9  ;;  %v2217_v4 = vmul.f32 %v2128_v29, %v794_v53  ;;  %v2220_v5 = vmul.f32 %v2130_v30, %v861_v55 }
  0x8d   :  { %4532 = vst [vmem:[#allocation16_spill] sm:$0xff] %v2220_v5 }
  0x8f   :  { %1428 = vrot.lane.b32.xlu1 %v2021_v6, %s1963_s9  ;;  %1426 = vrot.lane.b32.xlu0 %v2023_v7, %s1963_s9 }
  0x93   :  { %1432 = vrot.lane.b32.xlu1 %v2027_v8, %s1963_s9  ;;  %1430 = vrot.lane.b32.xlu0 %v2029_v9, %s1963_s9 }
  0x95   :  { %v66_v0 = vpop.permute.xlu1 %65  ;;  %v62_v1 = vpop.permute.xlu0 %61 }
  0x96   :  { %v2224_v8 = vsel %vm93_vm0, %v66_v0, 0.0  ;;  %v2228_v16 = vsel %vm93_vm0, %v62_v1, 0.0 }
  0x97   :  { %1436 = vrot.lane.b32.xlu1 %v2033_v10, %s1963_s9  ;;  %1434 = vrot.lane.b32.xlu0 %v2035_v11, %s1963_s9  ;;  %v112_v34 = vrot.slane %v2228_v16, 6  ;;  %v183_v35 = vrot.slane %v2228_v16, 7  ;;  %v4495_v10 = vrot.slane %v2021_v6, 6  ;;  %v114_v11 = vrot.slane %v2224_v8, 6 }
  0x98   :  { %v185_v37 = vrot.slane %v2224_v8, 7  ;;  %v254_v44 = vmul.f32 %v2106_v22, %v2224_v8  ;;  %v286_v53 = vrot.slane %v2224_v8, 1 }
  0x99   :  { %v68_v38 = vpop.permute.xlu1 %67  ;;  %v64_v39 = vpop.permute.xlu0 %63  ;;  %v146_v46 = vsel %vm130_vm1, 0.0, %v112_v34  ;;  %v215_v59 = vsel %vm199_vm2, 0.0, %v183_v35 }
  0x9a   :  { %v2267_v51 = vsel %vm93_vm0, %v68_v38, 0.0  ;;  %v2271_v52 = vsel %vm93_vm0, %v64_v39, 0.0  ;;  %v149_v54 = vmul.f32 %v2108_v23, %v146_v46  ;;  %v353_v38 = vrot.slane %v2224_v8, 2 }
  0x9b   :  { %v115_v55 = vrot.slane %v2267_v51, 6  ;;  %v4491_v58 = vrot.slane %v2267_v51, 7  ;;  %1440 = vrot.lane.b32.xlu1 %v2039_v12, %s1963_s9  ;;  %1438 = vrot.lane.b32.xlu0 %v2041_v13, %s1963_s9  ;;  %v4492_v61 = vrot.slane %v2267_v51, 1  ;;  %v4493_v62 = vrot.slane %v2267_v51, 2 }
  0x9c   :  { %v113_v63 = vrot.slane %v2271_v52, 6  ;;  %v167_v0 = vadd.f32 %v2102_v19, %v149_v54  ;;  %v184_v13 = vrot.slane %v2271_v52, 7  ;;  %v252_v39 = vmul.f32 %v2106_v22, %v2228_v16 }
  0x9d   :  { %v143_v1 = vsel %vm130_vm1, %v114_v11, %v115_v55  ;;  %v212_v12 = vsel %vm199_vm2, %v185_v37, %v4491_v58  ;;  %v284_v46 = vrot.slane %v2228_v16, 1  ;;  %v218_v43 = vmul.f32 %v2110_v24, %v215_v59  ;;  %v72_v58 = vpop.permute.xlu1 %71 }
  0x9e   :  { %v152_v54 = vmul.f32 %v2108_v23, %v143_v1  ;;  %v221_v47 = vmul.f32 %v2110_v24, %v212_v12  ;;  %v314_v42 = vsel %vm300_vm3, %v286_v53, %v4492_v61  ;;  %v144_v45 = vsel %vm130_vm1, %v113_v63, %v114_v11 }
  0x9f   :  { %1444 = vrot.lane.b32.xlu1 %v2045_v14, %s1963_s9  ;;  %v145_v1 = vsel %vm130_vm1, %v112_v34, %v113_v63  ;;  %v151_v59 = vmul.f32 %v2108_v23, %v144_v45  ;;  %v213_v12 = vsel %vm199_vm2, %v184_v13, %v185_v37  ;;  %1442 = vrot.lane.b32.xlu0 %v2047_v15, %s1963_s9 }
  0xa0   :  { %v170_v8 = vadd.f32 %v2102_v19, %v152_v54  ;;  %v234_v61 = vadd.f32 %v218_v43, %v167_v0  ;;  %v381_v14 = vsel %vm367_vm4, %v353_v38, %v4493_v62  ;;  %v150_v11 = vmul.f32 %v2108_v23, %v145_v1 }
  0xa1   :  { %v214_v34 = vsel %vm199_vm2, %v183_v35, %v184_v13  ;;  %v169_v45 = vadd.f32 %v2102_v19, %v151_v59  ;;  %v220_v54 = vmul.f32 %v2110_v24, %v213_v12  ;;  %v285_v43 = vrot.slane %v2271_v52, 1  ;;  %v70_v13 = vpop.permute.xlu0 %69 }
  0xa2   :  { %v237_v63 = vadd.f32 %v221_v47, %v170_v8  ;;  %v219_v37 = vmul.f32 %v2110_v24, %v214_v34  ;;  %v168_v15 = vadd.f32 %v2102_v19, %v150_v11  ;;  %v352_v0 = vrot.slane %v2271_v52, 2 }
  0xa3   :  { %v2334_v62 = vsel %vm93_vm0, %v72_v58, 0.0  ;;  %v351_v1 = vrot.slane %v2228_v16, 2  ;;  %v255_v47 = vmul.f32 %v2106_v22, %v2267_v51  ;;  %v236_v35 = vadd.f32 %v220_v54, %v169_v45 }
  0xa4   :  { %v2345_v8 = vsel %vm130_vm1, %v4495_v10, %v4494_v36  ;;  %v2348_v59 = vmul.f32 %v2120_v26, %v314_v42  ;;  %v235_v58 = vadd.f32 %v219_v37, %v168_v15  ;;  %v253_v16 = vmul.f32 %v2106_v22, %v2271_v52 }
  0xa5   :  { %4538 = vst [vmem:[#allocation22_spill] sm:$0xff] %v2345_v8  ;;  %v315_v12 = vsel %vm300_vm3, %v285_v43, %v286_v53  ;;  %v268_v11 = vadd.f32 %v252_v39, %v234_v61  ;;  %v2354_v34 = vadd.f32 %v255_v47, %v237_v63  ;;  %v2357_v45 = vmul.f32 %v2122_v27, %v381_v14 }
  0xa6   :  { %v117_v54 = vrot.slane %v2334_v62, 6  ;;  %v269_v36 = vadd.f32 %v253_v16, %v235_v58  ;;  %v316_v42 = vsel %vm300_vm3, %v284_v46, %v285_v43  ;;  %v383_v37 = vsel %vm367_vm4, %v351_v1, %v352_v0  ;;  %v76_v1 = vpop.permute.xlu1 %75 }
  0xa7   :  { %v188_v52 = vrot.slane %v2334_v62, 7  ;;  %v2365_v15 = vadd.f32 %v254_v44, %v236_v35  ;;  %v320_v53 = vmul.f32 %v2120_v26, %v315_v12  ;;  %v382_v61 = vsel %vm367_vm4, %v352_v0, %v353_v38  ;;  %v74_v35 = vpop.permute.xlu0 %73 }
  0xa8   :  { %v2372_v39 = vsel %vm93_vm0, %v70_v13, 0.0  ;;  %v289_v14 = vrot.slane %v2334_v62, 1  ;;  %v4500_v46 = vrot.slane %v2334_v62, 2  ;;  %v319_v44 = vmul.f32 %v2120_v26, %v316_v42 }
  0xa9   :  { %v116_v63 = vrot.slane %v2372_v39, 6  ;;  %v187_v43 = vrot.slane %v2372_v39, 7  ;;  %v2380_v47 = vmul.f32 %v2122_v27, %v383_v37  ;;  %v288_v38 = vrot.slane %v2372_v39, 1 }
  0xaa   :  { %v336_v13 = vadd.f32 %v320_v53, %v269_v36  ;;  %v4539_v10 = vrot.slane %v2267_v51, 7  ;;  %v2400_v53 = vsel %vm93_vm0, %v76_v1, 0.0  ;;  %v387_v0 = vmul.f32 %v2122_v27, %v382_v61 }
  0xab   :  { %v141_v58 = vsel %vm130_vm1, %v116_v63, %v117_v54  ;;  %v142_v16 = vsel %vm130_vm1, %v115_v55, %v116_v63  ;;  %v210_v12 = vsel %vm199_vm2, %v187_v43, %v188_v52  ;;  %v312_v55 = vsel %vm300_vm3, %v288_v38, %v289_v14 }
  0xac   :  { %v153_v42 = vmul.f32 %v2108_v23, %v142_v16  ;;  %v154_v37 = vmul.f32 %v2108_v23, %v141_v58  ;;  %v211_v36 = vsel %vm199_vm2, %v4539_v10, %v187_v43  ;;  %v4540_v63 = vrot.slane %v2372_v39, 2 }
  0xad   :  { %v102_v16 = vsel %vm93_vm0, %v74_v35, 0.0  ;;  %v222_v1 = vmul.f32 %v2110_v24, %v211_v36  ;;  %v223_v61 = vmul.f32 %v2110_v24, %v210_v12  ;;  %v2417_v30 = vadd.f32 %v319_v44, %v268_v11 }
  0xae   :  { %v379_v58 = vsel %vm367_vm4, %v4540_v63, %v4500_v46  ;;  %v171_v10 = vadd.f32 %v2102_v19, %v153_v42  ;;  %v172_v43 = vadd.f32 %v2102_v19, %v154_v37  ;;  %v257_v8 = vmul.f32 %v2106_v22, %v2334_v62 }
  0xaf   :  { %v256_v29 = vmul.f32 %v2106_v22, %v2372_v39  ;;  %v2424_v46 = vadd.f32 %v387_v0, %v336_v13  ;;  %v4504_v37 = vrot.slane %v2400_v53, 7  ;;  %v4541_v36 = vrot.slane %v2267_v51, 1 }
  0xb0   :  { %v238_v35 = vadd.f32 %v222_v1, %v171_v10  ;;  %v239_v42 = vadd.f32 %v223_v61, %v172_v43  ;;  %v323_v44 = vmul.f32 %v2120_v26, %v312_v55  ;;  %v4503_v12 = vrot.slane %v2400_v53, 1 }
  0xb1   :  { %v2431_v11 = vsel %vm300_vm3, %v4541_v36, %v288_v38  ;;  %v118_v33 = vrot.slane %v102_v16, 6  ;;  %v390_v63 = vmul.f32 %v2122_v27, %v379_v58  ;;  %v189_v13 = vrot.slane %v102_v16, 7 }
  0xb2   :  { %v272_v9 = vadd.f32 %v256_v29, %v238_v35  ;;  %v4542_v10 = vrot.slane %v2400_v53, 6  ;;  %v273_v1 = vadd.f32 %v257_v8, %v239_v42  ;;  %v290_v61 = vrot.slane %v102_v16, 1  ;;  %v80_v35 = vpop.permute.xlu1 %79 }
  0xb3   :  { %v140_v38 = vsel %vm130_vm1, %v117_v54, %v118_v33  ;;  %v208_v58 = vsel %vm199_vm2, %v189_v13, %v4504_v37  ;;  %v209_v0 = vsel %vm199_vm2, %v188_v52, %v189_v13  ;;  %v259_v52 = vmul.f32 %v2106_v22, %v2400_v53 }
  0xb4   :  { %v139_v43 = vsel %vm130_vm1, %v118_v33, %v4542_v10  ;;  %v339_v55 = vadd.f32 %v323_v44, %v272_v9  ;;  %v155_v36 = vmul.f32 %v2108_v23, %v140_v38  ;;  %v225_v10 = vmul.f32 %v2110_v24, %v208_v58 }
  0xb5   :  { %v156_v29 = vmul.f32 %v2108_v23, %v139_v43  ;;  %v310_v9 = vsel %vm300_vm3, %v290_v61, %v4503_v12  ;;  %v311_v33 = vsel %vm300_vm3, %v289_v14, %v290_v61  ;;  %v224_v44 = vmul.f32 %v2110_v24, %v209_v0 }
  0xb6   :  { %v2458_v8 = vadd.f32 %v390_v63, %v339_v55  ;;  %v173_v54 = vadd.f32 %v2102_v19, %v155_v36  ;;  %v324_v13 = vmul.f32 %v2120_v26, %v311_v33  ;;  %v357_v43 = vrot.slane %v102_v16, 2  ;;  %v78_v55 = vpop.permute.xlu0 %77 }
  0xb7   :  { %v174_v42 = vadd.f32 %v2102_v19, %v156_v29  ;;  %v2468_v38 = vsel %vm93_vm0, %v80_v35, 0.0  ;;  %v258_v63 = vmul.f32 %v2106_v22, %v102_v16  ;;  %v325_v61 = vmul.f32 %v2120_v26, %v310_v9 }
  0xb8   :  { %v240_v58 = vadd.f32 %v224_v44, %v173_v54  ;;  %v340_v36 = vadd.f32 %v324_v13, %v273_v1  ;;  %v4543_v0 = vrot.slane %v2400_v53, 2  ;;  %v4544_v33 = vrot.slane %v2334_v62, 2  ;;  %v84_v1 = vpop.permute.xlu1 %83 }
  0xb9   :  { %v241_v14 = vadd.f32 %v225_v10, %v174_v42  ;;  %v121_v35 = vrot.slane %v2468_v38, 6  ;;  %v192_v9 = vrot.slane %v2468_v38, 7  ;;  %v104_v62 = vsel %vm93_vm0, %v78_v55, 0.0 }
  0xba   :  { %v377_v29 = vsel %vm367_vm4, %v357_v43, %v4543_v0  ;;  %v378_v12 = vsel %vm367_vm4, %v4544_v33, %v357_v43  ;;  %v274_v54 = vadd.f32 %v258_v63, %v240_v58  ;;  %v120_v33 = vrot.slane %v104_v62, 6  ;;  %v82_v31 = vpop.permute.xlu0 %81 }
  0xbb   :  { %v391_v10 = vmul.f32 %v2122_v27, %v378_v12  ;;  %v392_v16 = vmul.f32 %v2122_v27, %v377_v29  ;;  %v275_v13 = vadd.f32 %v259_v52, %v241_v14  ;;  %v191_v58 = vrot.slane %v104_v62, 7 }
  0xbc   :  { %v341_v0 = vadd.f32 %v325_v61, %v274_v54  ;;  %v261_v12 = vmul.f32 %v2106_v22, %v2468_v38  ;;  %v292_v63 = vrot.slane %v104_v62, 1  ;;  %v359_v29 = vrot.slane %v104_v62, 2 }
  0xbd   :  { %v2488_v43 = vadd.f32 %v391_v10, %v340_v36  ;;  %v2494_v37 = vsel %vm93_vm0, %v84_v1, 0.0  ;;  %v137_v55 = vsel %vm130_vm1, %v120_v33, %v121_v35  ;;  %v4545_v52 = vrot.slane %v2400_v53, 6 }
  0xbe   :  { %v2496_v42 = vadd.f32 %v392_v16, %v341_v0  ;;  %v206_v61 = vsel %vm199_vm2, %v191_v58, %v192_v9  ;;  %v158_v54 = vmul.f32 %v2108_v23, %v137_v55  ;;  %v4546_v10 = vrot.slane %v2400_v53, 7 }
  0xbf   :  { %v138_v14 = vsel %vm130_vm1, %v4545_v52, %v120_v33  ;;  %v260_v1 = vmul.f32 %v2106_v22, %v104_v62  ;;  %v227_v0 = vmul.f32 %v2110_v24, %v206_v61  ;;  %v4547_v44 = vrot.slane %v2468_v38, 1 }
  0xc0   :  { %v157_v36 = vmul.f32 %v2108_v23, %v138_v14  ;;  %v207_v16 = vsel %vm199_vm2, %v4546_v10, %v191_v58  ;;  %v4548_v52 = vrot.slane %v2400_v53, 1  ;;  %v4549_v55 = vrot.slane %v2468_v38, 2 }
  0xc1   :  { %v308_v33 = vsel %vm300_vm3, %v292_v63, %v4547_v44  ;;  %v176_v62 = vadd.f32 %v2102_v19, %v158_v54  ;;  %v226_v61 = vmul.f32 %v2110_v24, %v207_v16  ;;  %v4550_v21 = vrot.slane %v2400_v53, 2 }
  0xc2   :  { %v309_v14 = vsel %vm300_vm3, %v4548_v52, %v292_v63  ;;  %v375_v32 = vsel %vm367_vm4, %v359_v29, %v4549_v55  ;;  %v175_v58 = vadd.f32 %v2102_v19, %v157_v36  ;;  %v327_v44 = vmul.f32 %v2120_v26, %v308_v33 }
  0xc3   :  { %v326_v10 = vmul.f32 %v2120_v26, %v309_v14  ;;  %v376_v63 = vsel %vm367_vm4, %v4550_v21, %v359_v29  ;;  %v243_v36 = vadd.f32 %v227_v0, %v176_v62  ;;  %v394_v16 = vmul.f32 %v2122_v27, %v375_v32 }
  0xc4   :  { %v242_v20 = vadd.f32 %v226_v61, %v175_v58  ;;  %v393_v54 = vmul.f32 %v2122_v27, %v376_v63  ;;  %v263_v14 = vmul.f32 %v2106_v22, %v2494_v37  ;;  %v4505_v33 = vrot.slane %v2494_v37, 1  ;;  %v88_v58 = vpop.permute.xlu1 %87 }
  0xc5   :  { %v342_v5 = vadd.f32 %v326_v10, %v275_v13  ;;  %v106_v53 = vsel %vm93_vm0, %v82_v31, 0.0  ;;  %v4506_v13 = vrot.slane %v2494_v37, 2  ;;  %v277_v0 = vadd.f32 %v261_v12, %v243_v36 }
  0xc6   :  { %v276_v21 = vadd.f32 %v260_v1, %v242_v20  ;;  %v122_v52 = vrot.slane %v106_v53, 6  ;;  %v193_v55 = vrot.slane %v106_v53, 7  ;;  %v294_v62 = vrot.slane %v106_v53, 1  ;;  %v86_v1 = vpop.permute.xlu0 %85 }
  0xc7   :  { %v2544_v29 = vadd.f32 %v393_v54, %v342_v5  ;;  %v361_v61 = vrot.slane %v106_v53, 2  ;;  %v4551_v10 = vrot.slane %v2494_v37, 6  ;;  %v4552_v5 = vrot.slane %v2494_v37, 7 }
  0xc8   :  { %v343_v32 = vadd.f32 %v327_v44, %v276_v21  ;;  %v136_v31 = vsel %vm130_vm1, %v121_v35, %v122_v52  ;;  %v205_v44 = vsel %vm199_vm2, %v192_v9, %v193_v55  ;;  %v2563_v36 = vsel %vm93_vm0, %v88_v58, 0.0 }
  0xc9   :  { %v135_v63 = vsel %vm130_vm1, %v122_v52, %v4551_v10  ;;  %v204_v20 = vsel %vm199_vm2, %v193_v55, %v4552_v5  ;;  %v159_v54 = vmul.f32 %v2108_v23, %v136_v31  ;;  %v306_v52 = vsel %vm300_vm3, %v294_v62, %v4505_v33 }
  0xca   :  { %v160_v12 = vmul.f32 %v2108_v23, %v135_v63  ;;  %v2565_v21 = vadd.f32 %v394_v16, %v343_v32  ;;  %v229_v35 = vmul.f32 %v2110_v24, %v204_v20  ;;  %v4554_v10 = vrot.slane %v2468_v38, 1 }
  0xcb   :  { %v177_v9 = vadd.f32 %v2102_v19, %v159_v54  ;;  %v228_v58 = vmul.f32 %v2110_v24, %v205_v44  ;;  %v262_v32 = vmul.f32 %v2106_v22, %v106_v53  ;;  %v329_v31 = vmul.f32 %v2120_v26, %v306_v52 }
  0xcc   :  { %4553 = vst [vmem:[#allocation23_spill] sm:$0xff] %v2565_v21  ;;  %v307_v63 = vsel %vm300_vm3, %v4554_v10, %v294_v62  ;;  %v178_v55 = vadd.f32 %v2102_v19, %v160_v12  ;;  %v373_v5 = vsel %vm367_vm4, %v361_v61, %v4506_v13  ;;  %v4555_v20 = vrot.slane %v2468_v38, 2  ;;  %v92_v21 = vpop.permute.xlu1 %91  ;;  %v90_v13 = vpop.permute.xlu0 %89 }
  0xcd   :  { %v328_v16 = vmul.f32 %v2120_v26, %v307_v63  ;;  %v244_v54 = vadd.f32 %v228_v58, %v177_v9  ;;  %v396_v63 = vmul.f32 %v2122_v27, %v373_v5  ;;  %v125_v53 = vrot.slane %v2563_v36, 6 }
  0xce   :  { %v374_v62 = vsel %vm367_vm4, %v4555_v20, %v361_v61  ;;  %v245_v12 = vadd.f32 %v229_v35, %v178_v55  ;;  %v196_v52 = vrot.slane %v2563_v36, 7  ;;  %v4508_v33 = vrot.slane %v2563_v36, 1 }
  0xcf   :  { %v344_v10 = vadd.f32 %v328_v16, %v277_v0  ;;  %v395_v44 = vmul.f32 %v2122_v27, %v374_v62  ;;  %v278_v2 = vadd.f32 %v262_v32, %v244_v54  ;;  %v108_v61 = vsel %vm93_vm0, %v86_v1, 0.0 }
  0xd0   :  { %v279_v35 = vadd.f32 %v263_v14, %v245_v12  ;;  %v4507_v0 = vrot.slane %v2563_v36, 2  ;;  %v124_v9 = vrot.slane %v108_v61, 6  ;;  %v195_v55 = vrot.slane %v108_v61, 7 }
  0xd1   :  { %v2595_v38 = vadd.f32 %v395_v44, %v344_v10  ;;  %v296_v58 = vrot.slane %v108_v61, 1  ;;  %v345_v16 = vadd.f32 %v329_v31, %v278_v2  ;;  %v363_v5 = vrot.slane %v108_v61, 2 }
  0xd2   :  { %v2602_v20 = vsel %vm93_vm0, %v92_v21, 0.0  ;;  %v2606_v32 = vsel %vm93_vm0, %v90_v13, 0.0  ;;  %v133_v62 = vsel %vm130_vm1, %v124_v9, %v125_v53  ;;  %v4557_v14 = vrot.slane %v2494_v37, 6 }
  0xd3   :  { %4556 = vst [vmem:[#allocation24_spill] sm:$0xff] %v2595_v38  ;;  %v202_v2 = vsel %vm199_vm2, %v195_v55, %v196_v52  ;;  %v4558_v31 = vrot.slane %v2494_v37, 7  ;;  %v4559_v54 = vrot.slane %v2372_v39, 2  ;;  %v4560_v13 = vrot.slane %v2267_v51, 2 }
  0xd4   :  { %v134_v1 = vsel %vm130_vm1, %v4557_v14, %v124_v9  ;;  %v2626_v10 = vadd.f32 %v396_v63, %v345_v16  ;;  %v162_v9 = vmul.f32 %v2108_v23, %v133_v62  ;;  %v4562_v39 = vrot.slane %v2494_v37, 1 }
  0xd5   :  { %v203_v21 = vsel %vm199_vm2, %v4558_v31, %v195_v55  ;;  %v380_v12 = vsel %vm367_vm4, %v4560_v13, %v4559_v54  ;;  %v161_v44 = vmul.f32 %v2108_v23, %v134_v1  ;;  %v304_v55 = vsel %vm300_vm3, %v296_v58, %v4508_v33 }
  0xd6   :  { %4561 = vst [vmem:[#allocation25_spill] sm:$0xff] %v2626_v10  ;;  %v230_v14 = vmul.f32 %v2110_v24, %v203_v21  ;;  %v305_v51 = vsel %vm300_vm3, %v4562_v39, %v296_v58  ;;  %v371_v63 = vsel %vm367_vm4, %v363_v5, %v4507_v0  ;;  %v180_v62 = vadd.f32 %v2102_v19, %v162_v9 }
  0xd7   :  { %v179_v16 = vadd.f32 %v2102_v19, %v161_v44  ;;  %v231_v1 = vmul.f32 %v2110_v24, %v202_v2  ;;  %v330_v31 = vmul.f32 %v2120_v26, %v305_v51  ;;  %v322_v21 = vmul.f32 %v2120_v26, %v2431_v11 }
  0xd8   :  { %v264_v58 = vmul.f32 %v2106_v22, %v108_v61  ;;  %v4563_v54 = vrot.slane %v2494_v37, 2  ;;  %v127_v39 = vrot.slane %v2602_v20, 6  ;;  %v389_v51 = vmul.f32 %v2122_v27, %v380_v12 }
  0xd9   :  { %v246_v0 = vadd.f32 %v230_v14, %v179_v16  ;;  %v247_v44 = vadd.f32 %v231_v1, %v180_v62  ;;  %v346_v33 = vadd.f32 %v330_v31, %v279_v35  ;;  %v338_v2 = vadd.f32 %v322_v21, %v2354_v34  ;;  %v421_v21 = vpop.permute.xlu1 %420 }
  0xda   :  { %v372_v13 = vsel %vm367_vm4, %v4563_v54, %v363_v5  ;;  %v198_v11 = vrot.slane %v2602_v20, 7  ;;  %v126_v61 = vrot.slane %v2606_v32, 6  ;;  %v331_v37 = vmul.f32 %v2120_v26, %v304_v55 }
  0xdb   :  { %v397_v9 = vmul.f32 %v2122_v27, %v372_v13  ;;  %v280_v10 = vadd.f32 %v264_v58, %v246_v0  ;;  %v197_v5 = vrot.slane %v2606_v32, 7  ;;  %v265_v35 = vmul.f32 %v2106_v22, %v2563_v36 }
  0xdc   :  { %v398_v14 = vmul.f32 %v2122_v27, %v371_v63  ;;  %v131_v34 = vsel %vm130_vm1, %v126_v61, %v127_v39  ;;  %v132_v12 = vsel %vm130_vm1, %v125_v53, %v126_v61  ;;  %v299_v0 = vrot.slane %v2602_v20, 1 }
  0xdd   :  { %v2662_v38 = vadd.f32 %v397_v9, %v346_v33  ;;  %v347_v16 = vadd.f32 %v331_v37, %v280_v10  ;;  %v366_v55 = vrot.slane %v2602_v20, 2  ;;  %v163_v33 = vmul.f32 %v2108_v23, %v132_v12 }
  0xde   :  { %v164_v62 = vmul.f32 %v2108_v23, %v131_v34  ;;  %v200_v1 = vsel %vm199_vm2, %v197_v5, %v198_v11  ;;  %v201_v63 = vsel %vm199_vm2, %v196_v52, %v197_v5  ;;  %v281_v31 = vadd.f32 %v265_v35, %v247_v44  ;;  %v419_v11 = vpop.permute.xlu0 %418 }
  0xdf   :  { %v2680_v58 = vadd.f32 %v389_v51, %v338_v2  ;;  %v2682_v53 = vadd.f32 %v398_v14, %v347_v16  ;;  %v181_v10 = vadd.f32 %v2102_v19, %v163_v33  ;;  %v232_v54 = vmul.f32 %v2110_v24, %v201_v63 }
  0xe0   :  { %v182_v13 = vadd.f32 %v2102_v19, %v164_v62  ;;  %v233_v23 = vmul.f32 %v2110_v24, %v200_v1  ;;  %v298_v39 = vrot.slane %v2606_v32, 1  ;;  %v365_v9 = vrot.slane %v2606_v32, 2 }
  0xe1   :  { %v267_v52 = vmul.f32 %v2106_v22, %v2602_v20  ;;  %v248_v44 = vadd.f32 %v232_v54, %v181_v10  ;;  %v266_v2 = vmul.f32 %v2106_v22, %v2606_v32  ;;  %v2696_v51 = vsel %vm450_vm5, %v421_v21, 0.0 }
  0xe2   :  { %v249_v61 = vadd.f32 %v233_v23, %v182_v13  ;;  %v302_v19 = vsel %vm300_vm3, %v298_v39, %v299_v0  ;;  %v4564_v24 = vrot.slane %v2563_v36, 1  ;;  %v369_v5 = vsel %vm367_vm4, %v365_v9, %v366_v55 }
  0xe3   :  { %v282_v22 = vadd.f32 %v266_v2, %v248_v44  ;;  %v333_v35 = vmul.f32 %v2120_v26, %v302_v19  ;;  %v4565_v14 = vrot.slane %v2563_v36, 2  ;;  %v2716_v12 = vsel %vm300_vm3, %v299_v0, 0.0  ;;  %v425_v36 = vpop.permute.xlu1 %424  ;;  %v423_v44 = vpop.permute.xlu0 %422 }
  0xe4   :  { %v303_v37 = vsel %vm300_vm3, %v4564_v24, %v298_v39  ;;  %v2718_v16 = vadd.f32 %v267_v52, %v249_v61  ;;  %v470_v33 = vrot.slane %v2696_v51, 6  ;;  %v536_v62 = vrot.slane %v2696_v51, 7 }
  0xe5   :  { %v332_v32 = vmul.f32 %v2120_v26, %v303_v37  ;;  %v370_v34 = vsel %vm367_vm4, %v4565_v14, %v365_v9  ;;  %v349_v63 = vadd.f32 %v333_v35, %v282_v22  ;;  %v400_v10 = vmul.f32 %v2122_v27, %v369_v5 }
  0xe6   :  { %v399_v21 = vmul.f32 %v2122_v27, %v370_v34  ;;  %v604_v54 = vmul.f32 %v2126_v28, %v2696_v51  ;;  %v636_v13 = vrot.slane %v2696_v51, 1  ;;  %v702_v0 = vrot.slane %v2696_v51, 2 }
  0xe7   :  { %v348_v1 = vadd.f32 %v332_v32, %v281_v31  ;;  %v453_v23 = vsel %vm450_vm5, %v419_v11, 0.0  ;;  %v2732_v9 = vadd.f32 %v400_v10, %v349_v63  ;;  %v402_v2 = vadd.f32 %v2380_v47, %v2417_v30  ;;  %v427_v20 = vpop.permute.xlu0 %426 }
  0xe8   :  { %v469_v31 = vrot.slane %v453_v23, 6  ;;  %v535_v52 = vrot.slane %v453_v23, 7  ;;  %v635_v61 = vrot.slane %v453_v23, 1  ;;  %v701_v19 = vrot.slane %v453_v23, 2 }
  0xe9   :  { %v2730_v39 = vadd.f32 %v399_v21, %v348_v1  ;;  %v2738_v24 = vsel %vm450_vm5, %v425_v36, 0.0  ;;  %v337_v22 = vadd.f32 %v2348_v59, %v2365_v15  ;;  %v455_v32 = vsel %vm450_vm5, %v423_v44, 0.0 }
  0xea   :  { %v499_v51 = vsel %vm130_vm1, %v469_v31, %v470_v33  ;;  %v500_v11 = vsel %vm130_vm1, 0.0, %v469_v31  ;;  %v565_v37 = vsel %vm199_vm2, %v535_v52, %v536_v62  ;;  %v566_v5 = vsel %vm199_vm2, 0.0, %v535_v52 }
  0xeb   :  { %v503_v30 = vmul.f32 %v2149_v40, %v500_v11  ;;  %v504_v47 = vmul.f32 %v2149_v40, %v499_v51  ;;  %v569_v35 = vmul.f32 %v2152_v41, %v566_v5  ;;  %v603_v14 = vmul.f32 %v2126_v28, %v453_v23 }
  0xec   :  { %v666_v34 = vsel %vm300_vm3, %v635_v61, %v636_v13  ;;  %v472_v1 = vrot.slane %v2738_v24, 6  ;;  %v570_v10 = vmul.f32 %v2152_v41, %v565_v37  ;;  %v538_v36 = vrot.slane %v2738_v24, 7 }
  0xed   :  { %v519_v63 = vadd.f32 %v503_v30, %v402_v2  ;;  %v520_v21 = vadd.f32 %v504_v47, %v2424_v46  ;;  %v669_v59 = vmul.f32 %v2187_v56, %v666_v34  ;;  %v732_v15 = vsel %vm367_vm4, %v701_v19, %v702_v0 }
  0xee   :  { %v638_v31 = vrot.slane %v2738_v24, 1  ;;  %v471_v23 = vrot.slane %v455_v32, 6  ;;  %v404_v61 = vadd.f32 %v2357_v45, %v337_v22  ;;  %v537_v51 = vrot.slane %v455_v32, 7 }
  0xef   :  { %v585_v52 = vadd.f32 %v569_v35, %v519_v63  ;;  %v586_v44 = vadd.f32 %v570_v10, %v520_v21  ;;  %v637_v11 = vrot.slane %v455_v32, 1  ;;  %v703_v37 = vrot.slane %v455_v32, 2  ;;  %v429_v10 = vpop.permute.xlu1 %428 }
  0xf0   :  { %v497_v46 = vsel %vm130_vm1, %v471_v23, %v472_v1  ;;  %v498_v2 = vsel %vm130_vm1, %v470_v33, %v471_v23  ;;  %v563_v45 = vsel %vm199_vm2, %v537_v51, %v538_v36  ;;  %v368_v47 = vsel %vm367_vm4, %v366_v55, 0.0 }
  0xf1   :  { %v619_v5 = vadd.f32 %v603_v14, %v585_v52  ;;  %v505_v19 = vmul.f32 %v2149_v40, %v498_v2  ;;  %v506_v30 = vmul.f32 %v2149_v40, %v497_v46  ;;  %v704_v22 = vrot.slane %v2738_v24, 2 }
  0xf2   :  { %v564_v33 = vsel %vm199_vm2, %v536_v62, %v537_v51  ;;  %v620_v35 = vadd.f32 %v604_v54, %v586_v44  ;;  %v664_v21 = vsel %vm300_vm3, %v637_v11, %v638_v31  ;;  %v735_v23 = vmul.f32 %v2242_v25, %v732_v15 }
  0xf3   :  { %v685_v14 = vadd.f32 %v669_v59, %v619_v5  ;;  %v521_v34 = vadd.f32 %v505_v19, %v404_v61  ;;  %v571_v63 = vmul.f32 %v2152_v41, %v564_v33  ;;  %v572_v55 = vmul.f32 %v2152_v41, %v563_v45 }
  0xf4   :  { %v605_v52 = vmul.f32 %v2126_v28, %v455_v32  ;;  %v665_v62 = vsel %vm300_vm3, %v636_v13, %v637_v11  ;;  %v522_v54 = vadd.f32 %v506_v30, %v2680_v58  ;;  %v731_v61 = vsel %vm367_vm4, %v702_v0, %v703_v37 }
  0xf5   :  { %v587_v59 = vadd.f32 %v571_v63, %v521_v34  ;;  %v670_v44 = vmul.f32 %v2187_v56, %v665_v62  ;;  %v671_v51 = vmul.f32 %v2187_v56, %v664_v21  ;;  %v730_v15 = vsel %vm367_vm4, %v703_v37, %v704_v22 }
  0xf6   :  { %v2807_v32 = vsel %vm450_vm5, %v429_v10, 0.0  ;;  %v457_v58 = vsel %vm450_vm5, %v427_v20, 0.0  ;;  %v751_v13 = vadd.f32 %v735_v23, %v685_v14  ;;  %v2814_v0 = vmul.f32 %v2120_v26, %v2716_v12 }
  0xf7   :  { %v621_v46 = vadd.f32 %v605_v52, %v587_v59  ;;  %v686_v2 = vadd.f32 %v670_v44, %v620_v35  ;;  %v474_v11 = vrot.slane %v2807_v32, 6  ;;  %v2817_v5 = vmul.f32 %v2122_v27, %v368_v47 }
  0xf8   :  { %v736_v37 = vmul.f32 %v2242_v25, %v731_v61  ;;  %v4566_v19 = vrot.slane %v2021_v6, 6  ;;  %v4567_v30 = vrot.slane %v2023_v7, 6  ;;  %v606_v33 = vmul.f32 %v2126_v28, %v2738_v24  ;;  %v431_v61 = vpop.permute.xlu0 %430 }
  0xf9   :  { %v588_v35 = vadd.f32 %v572_v55, %v522_v54  ;;  %v687_v14 = vadd.f32 %v671_v51, %v621_v46  ;;  %v473_v26 = vrot.slane %v457_v58, 6  ;;  %v737_v12 = vmul.f32 %v2242_v25, %v730_v15 }
  0xfa   :  { %v2826_v45 = vsel %vm130_vm1, %v4567_v30, %v4566_v19  ;;  %v752_v27 = vadd.f32 %v736_v37, %v686_v2  ;;  %v539_v47 = vrot.slane %v457_v58, 7  ;;  %v639_v34 = vrot.slane %v457_v58, 1 }
  0xfb   :  { %v817_v63 = vadd.f32 %v2164_v48, %v751_v13  ;;  %v540_v21 = vrot.slane %v2807_v32, 7  ;;  %v495_v10 = vsel %vm130_vm1, %v473_v26, %v474_v11  ;;  %v496_v20 = vsel %vm130_vm1, %v472_v1, %v473_v26  ;;  %v433_v1 = vpop.permute.xlu1 %432 }
  0xfc   :  { %v640_v23 = vrot.slane %v2807_v32, 1  ;;  %v507_v55 = vmul.f32 %v2149_v40, %v496_v20  ;;  %v508_v52 = vmul.f32 %v2149_v40, %v495_v10  ;;  %v562_v48 = vsel %vm199_vm2, %v538_v36, %v539_v47 }
  0xfd   :  { %v753_v62 = vadd.f32 %v737_v12, %v687_v14  ;;  %v608_v54 = vmul.f32 %v2126_v28, %v2807_v32  ;;  %v706_v59 = vrot.slane %v2807_v32, 2  ;;  %v607_v44 = vmul.f32 %v2126_v28, %v457_v58 }
  0xfe   :  { %v818_v51 = vadd.f32 %v2170_v50, %v752_v27  ;;  %v523_v15 = vadd.f32 %v507_v55, %v2458_v8  ;;  %v573_v13 = vmul.f32 %v2152_v41, %v562_v48  ;;  %v663_v36 = vsel %vm300_vm3, %v638_v31, %v639_v34 }
  0xff   :  { %v524_v46 = vadd.f32 %v508_v52, %v2488_v43  ;;  %v561_v2 = vsel %vm199_vm2, %v539_v47, %v540_v21  ;;  %v622_v37 = vadd.f32 %v606_v33, %v588_v35  ;;  %v705_v19 = vrot.slane %v457_v58, 2 }
 0x100   :  { %v589_v30 = vadd.f32 %v573_v13, %v523_v15  ;;  %v662_v50 = vsel %vm300_vm3, %v639_v34, %v640_v23  ;;  %v2864_v8 = vsel %vm450_vm5, %v433_v1, 0.0  ;;  %v459_v14 = vsel %vm450_vm5, %v431_v61, 0.0 }
 0x101   :  { %v2869_v31 = vadd.f32 %v2167_v49, %v817_v63  ;;  %v672_v43 = vmul.f32 %v2187_v56, %v663_v36  ;;  %v729_v58 = vsel %vm367_vm4, %v704_v22, %v705_v19  ;;  %v476_v33 = vrot.slane %v2864_v8, 6 }
 0x102   :  { %v2878_v35 = vadd.f32 %v2190_v57, %v753_v62  ;;  %v2881_v26 = vadd.f32 %v2198_v60, %v818_v51  ;;  %v574_v12 = vmul.f32 %v2152_v41, %v561_v2  ;;  %v623_v27 = vadd.f32 %v607_v44, %v589_v30 }
 0x103   :  { %v673_v49 = vmul.f32 %v2187_v56, %v662_v50  ;;  %v688_v47 = vadd.f32 %v672_v43, %v622_v37  ;;  %v728_v24 = vsel %vm367_vm4, %v705_v19, %v706_v59  ;;  %v475_v22 = vrot.slane %v459_v14, 6  ;;  %v435_v19 = vpop.permute.xlu0 %434 }
 0x104   :  { %v590_v34 = vadd.f32 %v574_v12, %v524_v46  ;;  %v738_v63 = vmul.f32 %v2242_v25, %v729_v58  ;;  %v542_v57 = vrot.slane %v2864_v8, 7  ;;  %v541_v10 = vrot.slane %v459_v14, 7 }
 0x105   :  { %v689_v60 = vadd.f32 %v673_v49, %v623_v27  ;;  %v493_v20 = vsel %vm130_vm1, %v475_v22, %v476_v33  ;;  %v494_v55 = vsel %vm130_vm1, %v474_v11, %v475_v22  ;;  %v641_v52 = vrot.slane %v459_v14, 1  ;;  %v437_v11 = vpop.permute.xlu1 %436 }
 0x106   :  { %v739_v48 = vmul.f32 %v2242_v25, %v728_v24  ;;  %v642_v62 = vrot.slane %v2864_v8, 1  ;;  %v509_v44 = vmul.f32 %v2149_v40, %v494_v55  ;;  %v510_v1 = vmul.f32 %v2149_v40, %v493_v20 }
 0x107   :  { %v754_v61 = vadd.f32 %v738_v63, %v688_v47  ;;  %v610_v51 = vmul.f32 %v2126_v28, %v2864_v8  ;;  %v560_v15 = vsel %vm199_vm2, %v540_v21, %v541_v10  ;;  %v661_v13 = vsel %vm300_vm3, %v640_v23, %v641_v52 }
 0x108   :  { %v708_v36 = vrot.slane %v2864_v8, 2  ;;  %v525_v46 = vadd.f32 %v509_v44, %v2496_v42  ;;  %v559_v2 = vsel %vm199_vm2, %v541_v10, %v542_v57  ;;  %v624_v37 = vadd.f32 %v608_v54, %v590_v34 }
 0x109   :  { %v755_v30 = vadd.f32 %v739_v48, %v689_v60  ;;  %v526_v50 = vadd.f32 %v510_v1, %v2544_v29  ;;  %v575_v43 = vmul.f32 %v2152_v41, %v560_v15  ;;  %v609_v21 = vmul.f32 %v2126_v28, %v459_v14  ;;  %v4568_v15 = vld [vmem:[#allocation15_spill] sm:$0xff] }
 0x10a   :  { %v660_v23 = vsel %vm300_vm3, %v641_v52, %v642_v62  ;;  %v674_v58 = vmul.f32 %v2187_v56, %v661_v13  ;;  %v707_v8 = vrot.slane %v459_v14, 2  ;;  %v2917_v42 = vsel %vm450_vm5, %v437_v11, 0.0 }
 0x10b   :  { %v820_v54 = vadd.f32 %v2214_v3, %v754_v61  ;;  %v576_v12 = vmul.f32 %v2152_v41, %v559_v2  ;;  %v591_v27 = vadd.f32 %v575_v43, %v525_v46  ;;  %v461_v29 = vsel %vm450_vm5, %v435_v19, 0.0 }
 0x10c   :  { %v690_v49 = vadd.f32 %v674_v58, %v624_v37  ;;  %v726_v47 = vsel %vm367_vm4, %v707_v8, %v708_v36  ;;  %v727_v14 = vsel %vm367_vm4, %v706_v59, %v707_v8  ;;  %v478_v24 = vrot.slane %v2917_v42, 6  ;;  %v4569_v37 = vld [vmem:[#allocation16_spill] sm:$0xff]  ;;  %v4572_v8 = vld [vmem:[#allocation18_spill] sm:$0xff] }
 0x10d   :  { %v821_v22 = vadd.f32 %v2217_v4, %v755_v30  ;;  %v592_v3 = vadd.f32 %v576_v12, %v526_v50  ;;  %v625_v34 = vadd.f32 %v609_v21, %v591_v27  ;;  %v675_v63 = vmul.f32 %v2187_v56, %v660_v23  ;;  %v4570_v30 = vld [vmem:[#allocation17_spill] sm:$0xff]  ;;  %v4571_v21 = vld [vmem:[#allocation23_spill] sm:$0xff] }
 0x10e   :  { %v740_v10 = vmul.f32 %v2242_v25, %v727_v14  ;;  %v544_v60 = vrot.slane %v2917_v42, 7  ;;  %v477_v20 = vrot.slane %v461_v29, 6  ;;  %v543_v55 = vrot.slane %v461_v29, 7  ;;  %v4573_v27 = vld [vmem:[#allocation19_spill] sm:$0xff] }
 0x10f   :  { %v691_v52 = vadd.f32 %v675_v63, %v625_v34  ;;  %v741_v32 = vmul.f32 %v2242_v25, %v726_v47  ;;  %v644_v48 = vrot.slane %v2917_v42, 1  ;;  %v643_v59 = vrot.slane %v461_v29, 1  ;;  %v4574_v47 = vld [vmem:[#allocation24_spill] sm:$0xff]  ;;  %v441_v34 = vpop.permute.xlu1 %440 }
 0x110   :  { %v756_v44 = vadd.f32 %v740_v10, %v690_v49  ;;  %v491_v4 = vsel %vm130_vm1, %v477_v20, %v478_v24  ;;  %v492_v1 = vsel %vm130_vm1, %v476_v33, %v477_v20  ;;  %v558_v61 = vsel %vm199_vm2, %v542_v57, %v543_v55 }
 0x111   :  { %v2946_v13 = vadd.f32 %v4568_v15, %v2878_v35  ;;  %v757_v11 = vadd.f32 %v741_v32, %v691_v52  ;;  %v511_v46 = vmul.f32 %v2149_v40, %v492_v1  ;;  %v512_v2 = vmul.f32 %v2149_v40, %v491_v4  ;;  %v4577_v1 = vld [vmem:[#allocation20_spill] sm:$0xff] }
 0x112   :  { %v2951_v19 = vadd.f32 %v4569_v37, %v820_v54  ;;  %v2954_v50 = vadd.f32 %v4570_v30, %v821_v22  ;;  %v626_v43 = vadd.f32 %v610_v51, %v592_v3  ;;  %v659_v33 = vsel %vm300_vm3, %v642_v62, %v643_v59  ;;  %v4578_v15 = vld [vmem:[#allocation12_spill] sm:$0xff] }
 0x113   :  { %v710_v57 = vrot.slane %v2917_v42, 2  ;;  %v527_v35 = vadd.f32 %v511_v46, %v4571_v21  ;;  %v557_v23 = vsel %vm199_vm2, %v543_v55, %v544_v60  ;;  %v577_v58 = vmul.f32 %v2152_v41, %v558_v61  ;;  %v4582_v21 = vld [vmem:[#allocation13_spill] sm:$0xff] }
 0x114   :  { %v822_v54 = vadd.f32 %v4572_v8, %v756_v44  ;;  %v658_v51 = vsel %vm300_vm3, %v643_v59, %v644_v48  ;;  %v676_v62 = vmul.f32 %v2187_v56, %v659_v33  ;;  %v709_v12 = vrot.slane %v461_v29, 2 }
 0x115   :  { %v823_v49 = vadd.f32 %v4573_v27, %v757_v11  ;;  %v528_v14 = vadd.f32 %v512_v2, %v4574_v47  ;;  %v593_v22 = vadd.f32 %v577_v58, %v527_v35  ;;  %v611_v3 = vmul.f32 %v2126_v28, %v461_v29  ;;  %v3018_v47 = vld [vmem:[#allocation3 + $0x48] sm:$0xff] }
 0x116   :  { %v612_v63 = vmul.f32 %v2126_v28, %v2917_v42  ;;  %v578_v10 = vmul.f32 %v2152_v41, %v557_v23  ;;  %v692_v20 = vadd.f32 %v676_v62, %v626_v43  ;;  %v725_v55 = vsel %vm367_vm4, %v708_v36, %v709_v12  ;;  %v439_v23 = vpop.permute.xlu0 %438 }
 0x117   :  { %v627_v52 = vadd.f32 %v611_v3, %v593_v22  ;;  %v677_v32 = vmul.f32 %v2187_v56, %v658_v51  ;;  %v724_v59 = vsel %vm367_vm4, %v709_v12, %v710_v57  ;;  %v4575_v29 = vrot.slane %v2021_v6, 7  ;;  %v4583_v6 = vld [vmem:[#allocation22_spill] sm:$0xff] }
 0x118   :  { %v4576_v44 = vrot.slane %v2023_v7, 7  ;;  %v2991_v61 = vadd.f32 %v4577_v1, %v822_v54  ;;  %v742_v36 = vmul.f32 %v2242_v25, %v725_v55  ;;  %v4579_v11 = vrot.slane %v4578_v15, 7  ;;  %v4581_v7 = vld [vmem:[#allocation21_spill] sm:$0xff]  ;;  %v4584_v51 = vld [vmem:[#allocation14_spill] sm:$0xff] }
 0x119   :  { %v4580_v46 = vmov %v4575_v29  ;;  %v3002_v37 = vsel %vm450_vm5, %v441_v34, 0.0  ;;  %v3005_v30 = vadd.f32 %v4581_v7, %v823_v49  ;;  %v594_v43 = vadd.f32 %v578_v10, %v528_v14  ;;  %v3026_v3 = vld [vmem:[#allocation3 + $0x50] sm:$0xff] }
 0x11a   :  { %v857_v4 = vsel %vm199_vm2, %v4576_v44, %v4575_v29  ;;  %v856_v2 = vsel %vm199_vm2, %v4580_v46, %v4579_v11  ;;  %v693_v33 = vadd.f32 %v677_v32, %v627_v52  ;;  %v808_v35 = vmul.f32 %v4582_v21, %v2826_v45 }
 0x11b   :  { %v743_v58 = vmul.f32 %v2242_v25, %v724_v59  ;;  %v758_v8 = vadd.f32 %v742_v36, %v692_v20  ;;  %v809_v54 = vmul.f32 %v4582_v21, %v4583_v6  ;;  %v874_v62 = vmul.f32 %v4584_v51, %v857_v4 }
 0x11c   :  { %v3014_v12 = vmul.f32 %v4584_v51, %v856_v2  ;;  %v480_v27 = vrot.slane %v3002_v37, 6  ;;  %v546_v49 = vrot.slane %v3002_v37, 7  ;;  %v776_v45 = vrot.slane %v3018_v47, 6 }
 0x11d   :  { %v3023_v14 = vmul.f32 %v2126_v28, %v3002_v37  ;;  %v646_v22 = vrot.slane %v3002_v37, 1  ;;  %v777_v34 = vrot.slane %v3026_v3, 6  ;;  %v463_v10 = vsel %vm450_vm5, %v439_v23, 0.0 }
 0x11e   :  { %v759_v20 = vadd.f32 %v743_v58, %v693_v33  ;;  %v712_v55 = vrot.slane %v3002_v37, 2  ;;  %v479_v52 = vrot.slane %v463_v10, 6  ;;  %v545_v32 = vrot.slane %v463_v10, 7 }
 0x11f   :  { %v824_v59 = vadd.f32 %v808_v35, %v758_v8  ;;  %v842_v29 = vrot.slane %v3018_v47, 7  ;;  %v843_v44 = vrot.slane %v3026_v3, 7  ;;  %v645_v4 = vrot.slane %v463_v10, 1 }
 0x120   :  { %v489_v1 = vsel %vm130_vm1, %v479_v52, %v480_v27  ;;  %v490_v36 = vsel %vm130_vm1, %v478_v24, %v479_v52  ;;  %v628_v11 = vadd.f32 %v612_v63, %v594_v43  ;;  %v711_v46 = vrot.slane %v463_v10, 2 }
 0x121   :  { %v513_v2 = vmul.f32 %v2149_v40, %v490_v36  ;;  %v514_v7 = vmul.f32 %v2149_v40, %v489_v1  ;;  %v556_v33 = vsel %vm199_vm2, %v544_v60, %v545_v32  ;;  %v788_v35 = vsel %vm130_vm1, %v776_v45, %v777_v34  ;;  %v4586_v60 = vld [vmem:[#allocation25_spill] sm:$0xff] }
 0x122   :  { %v3052_v23 = vadd.f32 %v809_v54, %v759_v20  ;;  %v613_v24 = vmul.f32 %v2126_v28, %v463_v10  ;;  %v657_v63 = vsel %vm300_vm3, %v644_v48, %v645_v4  ;;  %v4585_v43 = vrot.slane %v4578_v15, 6  ;;  %v445_v20 = vpop.permute.xlu1 %444 }
 0x123   :  { %v529_v8 = vadd.f32 %v513_v2, %v4586_v60  ;;  %v555_v6 = vsel %vm199_vm2, %v545_v32, %v546_v49  ;;  %v579_v54 = vmul.f32 %v2152_v41, %v556_v33  ;;  %v678_v10 = vmul.f32 %v2187_v56, %v657_v63  ;;  %v443_v60 = vpop.permute.xlu0 %442 }
 0x124   :  { %v789_v58 = vsel %vm130_vm1, %v4585_v43, %v776_v45  ;;  %v530_v52 = vadd.f32 %v514_v7, %v2662_v38  ;;  %v656_v48 = vsel %vm300_vm3, %v645_v4, %v646_v22  ;;  %v722_v45 = vsel %vm367_vm4, %v711_v46, %v712_v55 }
 0x125   :  { %v723_v32 = vsel %vm367_vm4, %v710_v57, %v711_v46  ;;  %v595_v1 = vadd.f32 %v579_v54, %v529_v8  ;;  %v694_v36 = vadd.f32 %v678_v10, %v628_v11  ;;  %v854_v38 = vsel %vm199_vm2, %v842_v29, %v843_v44  ;;  %v3106_v10 = vld [vmem:[#allocation3 + $0x58] sm:$0xff] }
 0x126   :  { %v744_v2 = vmul.f32 %v2242_v25, %v723_v32  ;;  %v3088_v4 = vadd.f32 %v874_v62, %v824_v59  ;;  %v580_v7 = vmul.f32 %v2152_v41, %v555_v6  ;;  %v810_v33 = vmul.f32 %v4582_v21, %v789_v58 }
 0x127   :  { %v3094_v42 = vsel %vm450_vm5, %v445_v20, 0.0  ;;  %v629_v57 = vadd.f32 %v613_v24, %v595_v1  ;;  %v679_v11 = vmul.f32 %v2187_v56, %v656_v48  ;;  %v4587_v63 = vrot.slane %v4578_v15, 7 }
 0x128   :  { %v760_v46 = vadd.f32 %v744_v2, %v694_v36  ;;  %v596_v62 = vadd.f32 %v580_v7, %v530_v52  ;;  %v745_v59 = vmul.f32 %v2242_v25, %v722_v45  ;;  %v811_v8 = vmul.f32 %v4582_v21, %v788_v35  ;;  %v3114_v45 = vld [vmem:[#allocation3 + $0x60] sm:$0xff] }
 0x129   :  { %v855_v43 = vsel %vm199_vm2, %v4587_v63, %v842_v29  ;;  %v877_v58 = vmul.f32 %v4584_v51, %v854_v38  ;;  %v695_v6 = vadd.f32 %v679_v11, %v629_v57  ;;  %v4509_v54 = vrot.slane %v3094_v42, 6 }
 0x12a   :  { %v548_v24 = vrot.slane %v3094_v42, 7  ;;  %v778_v15 = vrot.slane %v3106_v10, 6  ;;  %v876_v20 = vmul.f32 %v4584_v51, %v855_v43  ;;  %v648_v29 = vrot.slane %v3094_v42, 1 }
 0x12b   :  { %v714_v52 = vrot.slane %v3094_v42, 2  ;;  %v465_v35 = vsel %vm450_vm5, %v443_v60, 0.0  ;;  %v826_v48 = vadd.f32 %v810_v33, %v760_v46  ;;  %v4511_v32 = vrot.slane %v3114_v45, 6 }
 0x12c   :  { %v481_v1 = vrot.slane %v465_v35, 6  ;;  %v547_v36 = vrot.slane %v465_v35, 7  ;;  %v761_v2 = vadd.f32 %v745_v59, %v695_v6  ;;  %v844_v38 = vrot.slane %v3106_v10, 7 }
 0x12d   :  { %v4510_v7 = vrot.slane %v3114_v45, 7  ;;  %v647_v57 = vrot.slane %v465_v35, 1  ;;  %v713_v63 = vrot.slane %v465_v35, 2  ;;  %v630_v6 = vadd.f32 %v3023_v14, %v596_v62 }
 0x12e   :  { %v487_v11 = vsel %vm130_vm1, %v481_v1, %v4509_v54  ;;  %v488_v33 = vsel %vm130_vm1, %v480_v27, %v481_v1  ;;  %v553_v46 = vsel %vm199_vm2, %v547_v36, %v548_v24  ;;  %v554_v59 = vsel %vm199_vm2, %v546_v49, %v547_v36  ;;  %v449_v36 = vpop.permute.xlu1 %448 }
 0x12f   :  { %v515_v43 = vmul.f32 %v2149_v40, %v488_v33  ;;  %v516_v60 = vmul.f32 %v2149_v40, %v487_v11  ;;  %v581_v54 = vmul.f32 %v2152_v41, %v554_v59  ;;  %v582_v27 = vmul.f32 %v2152_v41, %v553_v46 }
 0x130   :  { %v655_v1 = vsel %vm300_vm3, %v646_v22, %v647_v57  ;;  %v787_v11 = vsel %vm130_vm1, %v777_v34, %v778_v15  ;;  %v654_v14 = vsel %vm300_vm3, %v647_v57, %v648_v29  ;;  %v827_v46 = vadd.f32 %v811_v8, %v761_v2 }
 0x131   :  { %v531_v33 = vadd.f32 %v515_v43, %v2682_v53  ;;  %v532_v49 = vadd.f32 %v516_v60, %v2730_v39  ;;  %v680_v62 = vmul.f32 %v2187_v56, %v655_v1  ;;  %v615_v22 = vmul.f32 %v2126_v28, %v465_v35 }
 0x132   :  { %v721_v34 = vsel %vm367_vm4, %v712_v55, %v713_v63  ;;  %v786_v53 = vsel %vm130_vm1, %v778_v15, %v4511_v32  ;;  %v681_v59 = vmul.f32 %v2187_v56, %v654_v14  ;;  %v720_v37 = vsel %vm367_vm4, %v713_v63, %v714_v52 }
 0x133   :  { %v597_v39 = vadd.f32 %v581_v54, %v531_v33  ;;  %v598_v43 = vadd.f32 %v582_v27, %v532_v49  ;;  %v696_v60 = vadd.f32 %v680_v62, %v630_v6  ;;  %v746_v57 = vmul.f32 %v2242_v25, %v721_v34  ;;  %v447_v62 = vpop.permute.xlu0 %446 }
 0x134   :  { %v812_v8 = vmul.f32 %v4582_v21, %v787_v11  ;;  %v468_v55 = vsel %vm450_vm5, %v449_v36, 0.0  ;;  %v852_v54 = vsel %vm199_vm2, %v844_v38, %v4510_v7  ;;  %v853_v15 = vsel %vm199_vm2, %v843_v44, %v844_v38 }
 0x135   :  { %v631_v35 = vadd.f32 %v615_v22, %v597_v39  ;;  %v762_v2 = vadd.f32 %v746_v57, %v696_v60  ;;  %v3183_v63 = vadd.f32 %v3014_v12, %v3052_v23  ;;  %v3185_v6 = vadd.f32 %v876_v20, %v826_v48  ;;  %v3204_v22 = vld [vmem:[#allocation3 + $0x68] sm:$0xff]  ;;  %v3211_v60 = vld [vmem:[#allocation3 + $0x70] sm:$0xff] }
 0x136   :  { %v616_v27 = vmul.f32 %v2126_v28, %v3094_v42  ;;  %v650_v1 = vrot.slane %v468_v55, 1  ;;  %v3189_v11 = vadd.f32 %v877_v58, %v827_v46  ;;  %v747_v49 = vmul.f32 %v2242_v25, %v720_v37 }
 0x137   :  { %v697_v33 = vadd.f32 %v681_v59, %v631_v35  ;;  %v813_v14 = vmul.f32 %v4582_v21, %v786_v53  ;;  %v3194_v44 = vmul.f32 %v4584_v51, %v853_v15  ;;  %v3197_v12 = vmul.f32 %v4584_v51, %v852_v54  ;;  %v3214_v59 = vld [vmem:[#allocation3 + $0x78] sm:$0xff] }
 0x138   :  { %v484_v23 = vrot.slane %v468_v55, 6  ;;  %v550_v20 = vrot.slane %v468_v55, 7  ;;  %v3199_v38 = vadd.f32 %v812_v8, %v762_v2  ;;  %v618_v58 = vmul.f32 %v2126_v28, %v468_v55 }
 0x139   :  { %v763_v48 = vadd.f32 %v747_v49, %v697_v33  ;;  %v716_v36 = vrot.slane %v468_v55, 2  ;;  %v651_v46 = vsel %vm300_vm3, %v650_v1, 0.0  ;;  %v780_v34 = vrot.slane %v3204_v22, 6 }
 0x13a   :  { %v350_v53 = vadd.f32 %v2814_v0, %v2718_v16  ;;  %v467_v39 = vsel %vm450_vm5, %v447_v62, 0.0  ;;  %v781_v57 = vrot.slane %v3211_v60, 6  ;;  %v782_v37 = vrot.slane %v3214_v59, 6 }
 0x13b   :  { %v483_v8 = vrot.slane %v467_v39, 6  ;;  %v549_v55 = vrot.slane %v467_v39, 7  ;;  %v846_v35 = vrot.slane %v3204_v22, 7  ;;  %v649_v54 = vrot.slane %v467_v39, 1 }
 0x13c   :  { %v417_v2 = vadd.f32 %v2817_v5, %v350_v53  ;;  %v715_v15 = vrot.slane %v467_v39, 2  ;;  %v684_v16 = vmul.f32 %v2187_v56, %v651_v46  ;;  %v4588_v33 = vrot.slane %v3094_v42, 6 }
 0x13d   :  { %v485_v0 = vsel %vm130_vm1, %v483_v8, %v484_v23  ;;  %v551_v62 = vsel %vm199_vm2, %v549_v55, %v550_v20  ;;  %v552_v5 = vsel %vm199_vm2, %v548_v24, %v549_v55  ;;  %v632_v46 = vadd.f32 %v616_v27, %v598_v43 }
 0x13e   :  { %v486_v49 = vsel %vm130_vm1, %v4588_v33, %v483_v8  ;;  %v518_v32 = vmul.f32 %v2149_v40, %v485_v0  ;;  %v583_v23 = vmul.f32 %v2152_v41, %v552_v5  ;;  %v584_v53 = vmul.f32 %v2152_v41, %v551_v62  ;;  %v1068_v62 = vpop.permute.xlu1 %1067 }
 0x13f   :  { %v517_v7 = vmul.f32 %v2149_v40, %v486_v49  ;;  %v652_v8 = vsel %vm300_vm3, %v649_v54, %v650_v1  ;;  %v653_v20 = vsel %vm300_vm3, %v648_v29, %v649_v54  ;;  %v718_v43 = vsel %vm367_vm4, %v715_v15, %v716_v36 }
 0x140   :  { %v534_v0 = vadd.f32 %v518_v32, %v417_v2  ;;  %v682_v24 = vmul.f32 %v2187_v56, %v653_v20  ;;  %v717_v41 = vsel %vm367_vm4, %v716_v36, 0.0  ;;  %v4512_v27 = vrot.slane %v3211_v60, 7 }
 0x141   :  { %v533_v40 = vadd.f32 %v517_v7, %v2732_v9  ;;  %v617_v1 = vmul.f32 %v2126_v28, %v467_v39  ;;  %v719_v29 = vsel %vm367_vm4, %v714_v52, %v715_v15  ;;  %v829_v2 = vadd.f32 %v813_v14, %v763_v48 }
 0x142   :  { %v600_v32 = vadd.f32 %v584_v53, %v534_v0  ;;  %v698_v7 = vadd.f32 %v682_v24, %v632_v46  ;;  %v748_v55 = vmul.f32 %v2242_v25, %v719_v29  ;;  %v683_v54 = vmul.f32 %v2187_v56, %v652_v8  ;;  %v3306_v0 = vld [vmem:[#allocation3 + $0x10] sm:$0xff] }
 0x143   :  { %v599_v9 = vadd.f32 %v583_v23, %v533_v40  ;;  %v749_v36 = vmul.f32 %v2242_v25, %v718_v43  ;;  %v4589_v33 = vrot.slane %v3114_v45, 6  ;;  %v783_v56 = vsel %vm130_vm1, %v781_v57, %v782_v37 }
 0x144   :  { %v634_v52 = vadd.f32 %v618_v58, %v600_v32  ;;  %v764_v39 = vadd.f32 %v748_v55, %v698_v7  ;;  %v784_v14 = vsel %vm130_vm1, %v780_v34, %v781_v57  ;;  %v4590_v48 = vrot.slane %v3114_v45, 7  ;;  %v1066_v7 = vpop.permute.xlu0 %1065 }
 0x145   :  { %v785_v28 = vsel %vm130_vm1, %v4589_v33, %v780_v34  ;;  %v633_v42 = vadd.f32 %v617_v1, %v599_v9  ;;  %v3282_v37 = vadd.f32 %v3194_v44, %v3199_v38  ;;  %v750_v34 = vmul.f32 %v2242_v25, %v717_v41  ;;  %v1887_v33 = vld [vmem:[#allocation3] sm:$0xff] }
 0x146   :  { %v814_v15 = vmul.f32 %v4582_v21, %v785_v28  ;;  %v851_v49 = vsel %vm199_vm2, %v4590_v48, %v846_v35  ;;  %v700_v5 = vadd.f32 %v684_v16, %v634_v52  ;;  %v850_v57 = vsel %vm199_vm2, %v846_v35, %v4512_v27  ;;  %v1885_v35 = vld [vmem:[#allocation3 + $0x8] sm:$0xff] }
 0x147   :  { %v699_v58 = vadd.f32 %v683_v54, %v633_v42  ;;  %v880_v23 = vmul.f32 %v4584_v51, %v851_v49  ;;  %v3290_v53 = vstv %s3242_s19  ;;  %v3295_v16 = vadd.f32 %v3197_v12, %v829_v2 }
 0x148   :  { %v830_v46 = vadd.f32 %v814_v15, %v764_v39  ;;  %v815_v20 = vmul.f32 %v4582_v21, %v784_v14  ;;  %v3300_v44 = vsel %vm1097_vm6, %v1068_v62, 0.0  ;;  %v816_v25 = vmul.f32 %v4582_v21, %v783_v56 }
 0x149   :  { %v765_v8 = vadd.f32 %v749_v36, %v699_v58  ;;  %v3304_v38 = vstv %s3256_s20  ;;  %v934_v40 = vrot.slane %v1885_v35, 1  ;;  %v935_v24 = vrot.slane %v3306_v0, 1 }
 0x14a   :  { %v766_v12 = vadd.f32 %v750_v34, %v700_v5  ;;  %v881_v43 = vmul.f32 %v4584_v51, %v850_v57  ;;  %v3310_v41 = vadd.f32 %v880_v23, %v830_v46  ;;  %v902_v1 = vmul.f32 %v1885_v35, %v3290_v53 }
 0x14b   :  { %v1117_v29 = vrot.slane %v3300_v44, 6  ;;  %v3315_v9 = vstv %s3265_s21  ;;  %v1000_v21 = vrot.slane %v1885_v35, 2  ;;  %v1001_v32 = vrot.slane %v3306_v0, 2 }
 0x14c   :  { %v831_v55 = vadd.f32 %v815_v20, %v765_v8  ;;  %v4517_v2 = vrot.slane %v3300_v44, 7  ;;  %v3323_v54 = vmul.f32 %v3304_v38, %v3300_v44  ;;  %v3326_v36 = vstv %s3268_s22 }
 0x14d   :  { %v901_v28 = vmul.f32 %v1887_v33, %v3290_v53  ;;  %v918_v42 = vadd.f32 %v902_v1, %v2881_v26  ;;  %v933_v52 = vrot.slane %v1887_v33, 1  ;;  %v963_v39 = vsel %vm300_vm3, %v934_v40, %v935_v24 }
 0x14e   :  { %v968_v15 = vmul.f32 %v3315_v9, %v963_v39  ;;  %v999_v56 = vrot.slane %v1887_v33, 2  ;;  %v1029_v14 = vsel %vm367_vm4, %v1000_v21, %v1001_v32  ;;  %v1100_v48 = vsel %vm1097_vm6, %v1066_v7, 0.0 }
 0x14f   :  { %v3346_v26 = vstv %s3292_s23  ;;  %v917_v49 = vadd.f32 %v901_v28, %v2869_v31  ;;  %v964_v62 = vsel %vm300_vm3, %v933_v52, %v934_v40  ;;  %v1116_v58 = vrot.slane %v1100_v48, 6 }
 0x150   :  { %v967_v5 = vmul.f32 %v3315_v9, %v964_v62  ;;  %v1030_v46 = vsel %vm367_vm4, %v999_v56, %v1000_v21  ;;  %v1034_v23 = vmul.f32 %v3326_v36, %v1029_v14  ;;  %v1182_v34 = vrot.slane %v1100_v48, 7  ;;  %v1072_v14 = vpop.permute.xlu1 %1071 }
 0x151   :  { %v984_v57 = vadd.f32 %v968_v15, %v918_v42  ;;  %v1033_v8 = vmul.f32 %v3326_v36, %v1030_v46  ;;  %v1146_v31 = vsel %vm130_vm1, %v1116_v58, %v1117_v29  ;;  %v1147_v20 = vsel %vm130_vm1, 0.0, %v1116_v58 }
 0x152   :  { %v4516_v35 = vrot.slane %v3300_v44, 1  ;;  %v4514_v40 = vrot.slane %v3300_v44, 2  ;;  %v983_v1 = vadd.f32 %v967_v5, %v917_v49  ;;  %v1150_v21 = vmul.f32 %v3346_v26, %v1147_v20 }
 0x153   :  { %v3366_v7 = vstv %s3318_s24  ;;  %v1151_v33 = vmul.f32 %v3346_v26, %v1146_v31  ;;  %v1213_v28 = vsel %vm199_vm2, 0.0, %v1182_v34  ;;  %v1282_v42 = vrot.slane %v1100_v48, 1 }
 0x154   :  { %v3371_v52 = vadd.f32 %v816_v25, %v766_v12  ;;  %v1049_v39 = vadd.f32 %v1033_v8, %v983_v1  ;;  %v1212_v15 = vsel %vm199_vm2, %v1182_v34, %v4517_v2  ;;  %v1348_v56 = vrot.slane %v1100_v48, 2 }
 0x155   :  { %v3377_v49 = vadd.f32 %v881_v43, %v831_v55  ;;  %v3380_v62 = vstv %s3328_s26  ;;  %v1050_v58 = vadd.f32 %v1034_v23, %v984_v57  ;;  %v903_v5 = vmul.f32 %v3306_v0, %v3290_v53  ;;  %v1070_v23 = vpop.permute.xlu0 %1069 }
 0x156   :  { %v3385_v46 = vstv %s3336_s27  ;;  %v1166_v25 = vadd.f32 %v1150_v21, %v1049_v39  ;;  %v1216_v12 = vmul.f32 %v3366_v7, %v1213_v28  ;;  %v1250_v8 = vmul.f32 %v3304_v38, %v1100_v48  ;;  %v1888_v48 = vld [vmem:[#allocation3 + $0x18] sm:$0xff] }
 0x157   :  { %v1167_v31 = vadd.f32 %v1151_v33, %v1050_v58  ;;  %v1217_v34 = vmul.f32 %v3366_v7, %v1212_v15  ;;  %v1313_v43 = vsel %vm300_vm3, %v1282_v42, %v4516_v35  ;;  %v3396_v55 = vsel %vm1097_vm6, %v1072_v14, 0.0  ;;  %v3403_v33 = vld [vmem:[#allocation3 + $0x20] sm:$0xff] }
 0x158   :  { %v1232_v57 = vadd.f32 %v1216_v12, %v1166_v25  ;;  %v1379_v20 = vsel %vm367_vm4, %v1348_v56, %v4514_v40  ;;  %v904_v1 = vmul.f32 %v1888_v48, %v3290_v53  ;;  %v936_v21 = vrot.slane %v1888_v48, 1 }
 0x159   :  { %v4513_v28 = vrot.slane %v3403_v33, 1  ;;  %v1002_v42 = vrot.slane %v1888_v48, 2  ;;  %v4515_v39 = vrot.slane %v3403_v33, 2  ;;  %v919_v15 = vadd.f32 %v903_v5, %v2946_v13 }
 0x15a   :  { %v1119_v14 = vrot.slane %v3396_v55, 6  ;;  %v920_v58 = vadd.f32 %v904_v1, %v2951_v19  ;;  %v962_v56 = vsel %vm300_vm3, %v935_v24, %v936_v21  ;;  %v1102_v25 = vsel %vm1097_vm6, %v1070_v23, 0.0 }
 0x15b   :  { %v961_v12 = vsel %vm300_vm3, %v936_v21, %v4513_v28  ;;  %v969_v48 = vmul.f32 %v3315_v9, %v962_v56  ;;  %v1027_v13 = vsel %vm367_vm4, %v1002_v42, %v4515_v39  ;;  %v1028_v19 = vsel %vm367_vm4, %v1001_v32, %v1002_v42 }
 0x15c   :  { %v1185_v24 = vrot.slane %v3396_v55, 7  ;;  %v970_v5 = vmul.f32 %v3315_v9, %v961_v12  ;;  %v1035_v23 = vmul.f32 %v3326_v36, %v1028_v19  ;;  %v1036_v1 = vmul.f32 %v3326_v36, %v1027_v13 }
 0x15d   :  { %v1266_v21 = vadd.f32 %v1250_v8, %v1232_v57  ;;  %v985_v56 = vadd.f32 %v969_v48, %v919_v15  ;;  %v1118_v27 = vrot.slane %v1102_v25, 6  ;;  %v1184_v28 = vrot.slane %v1102_v25, 7 }
 0x15e   :  { %v1233_v40 = vadd.f32 %v1217_v34, %v1167_v31  ;;  %v1285_v39 = vrot.slane %v3396_v55, 1  ;;  %v986_v35 = vadd.f32 %v970_v5, %v920_v58  ;;  %v1284_v0 = vrot.slane %v1102_v25, 1  ;;  %v1076_v58 = vpop.permute.xlu1 %1075 }
 0x15f   :  { %v1316_v2 = vmul.f32 %v3380_v62, %v1313_v43  ;;  %v1382_v32 = vmul.f32 %v3385_v46, %v1379_v20  ;;  %v1144_v42 = vsel %vm130_vm1, %v1118_v27, %v1119_v14  ;;  %v1145_v8 = vsel %vm130_vm1, %v1117_v29, %v1118_v27 }
 0x160   :  { %v1051_v57 = vadd.f32 %v1035_v23, %v985_v56  ;;  %v1052_v31 = vadd.f32 %v1036_v1, %v986_v35  ;;  %v1152_v34 = vmul.f32 %v3346_v26, %v1145_v8  ;;  %v1153_v15 = vmul.f32 %v3346_v26, %v1144_v42 }
 0x161   :  { %v1332_v43 = vadd.f32 %v1316_v2, %v1266_v21  ;;  %v1210_v20 = vsel %vm199_vm2, %v1184_v28, %v1185_v24  ;;  %v4591_v12 = vrot.slane %v3300_v44, 7  ;;  %v4592_v27 = vrot.slane %v3300_v44, 1 }
 0x162   :  { %v1168_v35 = vadd.f32 %v1152_v34, %v1051_v57  ;;  %v1169_v13 = vadd.f32 %v1153_v15, %v1052_v31  ;;  %v1267_v19 = vadd.f32 %v3323_v54, %v1233_v40  ;;  %v1311_v2 = vsel %vm300_vm3, %v1284_v0, %v1285_v39  ;;  %v1890_v57 = vld [vmem:[#allocation3 + $0x28] sm:$0xff] }
 0x163   :  { %v1211_v48 = vsel %vm199_vm2, %v4591_v12, %v1184_v28  ;;  %v1312_v29 = vsel %vm300_vm3, %v4592_v27, %v1284_v0  ;;  %v3465_v5 = vmul.f32 %v3304_v38, %v3396_v55  ;;  %v4519_v28 = vrot.slane %v3396_v55, 2 }
 0x164   :  { %v1350_v23 = vrot.slane %v1102_v25, 2  ;;  %v3470_v1 = vsel %vm1097_vm6, %v1076_v58, 0.0  ;;  %v1218_v21 = vmul.f32 %v3366_v7, %v1211_v48  ;;  %v1219_v54 = vmul.f32 %v3366_v7, %v1210_v20 }
 0x165   :  { %v1317_v40 = vmul.f32 %v3380_v62, %v1312_v29  ;;  %v905_v56 = vmul.f32 %v3403_v33, %v3290_v53  ;;  %v3477_v0 = vadd.f32 %v1382_v32, %v1332_v43  ;;  %v1252_v42 = vmul.f32 %v3304_v38, %v1102_v25  ;;  %v3487_v32 = vld [vmem:[#allocation3 + $0x30] sm:$0xff] }
 0x166   :  { %v1318_v8 = vmul.f32 %v3380_v62, %v1311_v2  ;;  %v906_v31 = vmul.f32 %v1890_v57, %v3290_v53  ;;  %v1234_v34 = vadd.f32 %v1218_v21, %v1168_v35  ;;  %v1235_v15 = vadd.f32 %v1219_v54, %v1169_v13 }
 0x167   :  { %v1333_v58 = vadd.f32 %v1317_v40, %v1267_v19  ;;  %v1121_v12 = vrot.slane %v3470_v1, 6  ;;  %v1377_v20 = vsel %vm367_vm4, %v1350_v23, %v4519_v28  ;;  %v938_v48 = vrot.slane %v1890_v57, 1  ;;  %v1074_v19 = vpop.permute.xlu0 %1073 }
 0x168   :  { %v4518_v25 = vrot.slane %v3487_v32, 1  ;;  %v1004_v43 = vrot.slane %v1890_v57, 2  ;;  %v4593_v27 = vrot.slane %v3300_v44, 2  ;;  %v4525_v35 = vrot.slane %v3470_v1, 7 }
 0x169   :  { %v4520_v13 = vrot.slane %v3487_v32, 2  ;;  %v921_v2 = vadd.f32 %v905_v56, %v2954_v50  ;;  %v922_v21 = vadd.f32 %v906_v31, %v2991_v61  ;;  %v4594_v40 = vrot.slane %v3403_v33, 1 }
 0x16a   :  { %v1378_v29 = vsel %vm367_vm4, %v4593_v27, %v1350_v23  ;;  %v959_v54 = vsel %vm300_vm3, %v938_v48, %v4518_v25  ;;  %v4595_v23 = vrot.slane %v3403_v33, 2  ;;  %v1268_v27 = vadd.f32 %v1252_v42, %v1234_v34 }
 0x16b   :  { %v960_v44 = vsel %vm300_vm3, %v4594_v40, %v938_v48  ;;  %v972_v61 = vmul.f32 %v3315_v9, %v959_v54  ;;  %v1025_v56 = vsel %vm367_vm4, %v1004_v43, %v4520_v13  ;;  %v4524_v31 = vrot.slane %v3470_v1, 1 }
 0x16c   :  { %v1026_v57 = vsel %vm367_vm4, %v4595_v23, %v1004_v43  ;;  %v971_v50 = vmul.f32 %v3315_v9, %v960_v44  ;;  %v1038_v48 = vmul.f32 %v3326_v36, %v1025_v56  ;;  %v1104_v33 = vsel %vm1097_vm6, %v1074_v19, 0.0 }
 0x16d   :  { %v1037_v25 = vmul.f32 %v3326_v36, %v1026_v57  ;;  %v988_v42 = vadd.f32 %v972_v61, %v922_v21  ;;  %v1120_v34 = vrot.slane %v1104_v33, 6  ;;  %v1186_v44 = vrot.slane %v1104_v33, 7  ;;  %v1080_v21 = vpop.permute.xlu1 %1079 }
 0x16e   :  { %v987_v40 = vadd.f32 %v971_v50, %v921_v2  ;;  %v1383_v54 = vmul.f32 %v3385_v46, %v1378_v29  ;;  %v1384_v23 = vmul.f32 %v3385_v46, %v1377_v20  ;;  %v4522_v28 = vrot.slane %v3470_v1, 2 }
 0x16f   :  { %v1286_v43 = vrot.slane %v1104_v33, 1  ;;  %v1334_v13 = vadd.f32 %v1318_v8, %v1268_v27  ;;  %v1142_v57 = vsel %vm130_vm1, %v1120_v34, %v1121_v12  ;;  %v1143_v19 = vsel %vm130_vm1, %v1119_v14, %v1120_v34 }
 0x170   :  { %v1352_v2 = vrot.slane %v1104_v33, 2  ;;  %v1053_v50 = vadd.f32 %v1037_v25, %v987_v40  ;;  %v1054_v29 = vadd.f32 %v1038_v48, %v988_v42  ;;  %v1154_v20 = vmul.f32 %v3346_v26, %v1143_v19 }
 0x171   :  { %v1155_v61 = vmul.f32 %v3346_v26, %v1142_v57  ;;  %v1208_v8 = vsel %vm199_vm2, %v1186_v44, %v4525_v35  ;;  %v1209_v27 = vsel %vm199_vm2, %v1185_v24, %v1186_v44  ;;  %v1309_v14 = vsel %vm300_vm3, %v1286_v43, %v4524_v31 }
 0x172   :  { %v1310_v25 = vsel %vm300_vm3, %v1285_v39, %v1286_v43  ;;  %v1255_v56 = vmul.f32 %v3304_v38, %v3470_v1  ;;  %v1170_v48 = vadd.f32 %v1154_v20, %v1053_v50  ;;  %v3554_v42 = vsel %vm1097_vm6, %v1080_v21, 0.0  ;;  %v1892_v20 = vld [vmem:[#allocation3 + $0x38] sm:$0xff] }
 0x173   :  { %v1171_v40 = vadd.f32 %v1155_v61, %v1054_v29  ;;  %v3556_v24 = vadd.f32 %v1383_v54, %v1333_v58  ;;  %v3558_v34 = vadd.f32 %v1384_v23, %v1334_v13  ;;  %v1254_v44 = vmul.f32 %v3304_v38, %v1104_v33  ;;  %v1078_v54 = vpop.permute.xlu0 %1077 }
 0x174   :  { %v1269_v57 = vadd.f32 %v3465_v5, %v1235_v15  ;;  %v1220_v19 = vmul.f32 %v3366_v7, %v1209_v27  ;;  %v1221_v39 = vmul.f32 %v3366_v7, %v1208_v8  ;;  %v1319_v43 = vmul.f32 %v3380_v62, %v1310_v25  ;;  %v3579_v27 = vld [vmem:[#allocation3 + $0x40] sm:$0xff] }
 0x175   :  { %v1320_v50 = vmul.f32 %v3380_v62, %v1309_v14  ;;  %v1375_v58 = vsel %vm367_vm4, %v1352_v2, %v4522_v28  ;;  %v4596_v13 = vrot.slane %v3396_v55, 2  ;;  %v1123_v5 = vrot.slane %v3554_v42, 6 }
 0x176   :  { %v1189_v15 = vrot.slane %v3554_v42, 7  ;;  %v1236_v23 = vadd.f32 %v1220_v19, %v1170_v48  ;;  %v1237_v21 = vadd.f32 %v1221_v39, %v1171_v40  ;;  %v907_v29 = vmul.f32 %v3487_v32, %v3290_v53 }
 0x177   :  { %v1376_v33 = vsel %vm367_vm4, %v4596_v13, %v1352_v2  ;;  %v908_v61 = vmul.f32 %v1892_v20, %v3290_v53  ;;  %v940_v8 = vrot.slane %v1892_v20, 1  ;;  %v4521_v55 = vrot.slane %v3579_v27, 1 }
 0x178   :  { %v1006_v14 = vrot.slane %v1892_v20, 2  ;;  %v4523_v2 = vrot.slane %v3579_v27, 2  ;;  %v1335_v25 = vadd.f32 %v1319_v43, %v1269_v57  ;;  %v923_v13 = vadd.f32 %v907_v29, %v3005_v30 }
 0x179   :  { %v924_v48 = vadd.f32 %v908_v61, %v3088_v4  ;;  %v1106_v40 = vsel %vm1097_vm6, %v1078_v54, 0.0  ;;  %v957_v19 = vsel %vm300_vm3, %v940_v8, %v4521_v55  ;;  %v4597_v39 = vrot.slane %v3487_v32, 1 }
 0x17a   :  { %v1023_v30 = vsel %vm367_vm4, %v1006_v14, %v4523_v2  ;;  %v4598_v4 = vrot.slane %v3487_v32, 2  ;;  %v1385_v43 = vmul.f32 %v3385_v46, %v1376_v33  ;;  %v974_v29 = vmul.f32 %v3315_v9, %v957_v19 }
 0x17b   :  { %v958_v20 = vsel %vm300_vm3, %v4597_v39, %v940_v8  ;;  %v1270_v55 = vadd.f32 %v1254_v44, %v1236_v23  ;;  %v1040_v8 = vmul.f32 %v3326_v36, %v1023_v30  ;;  %v1122_v39 = vrot.slane %v1106_v40, 6 }
 0x17c   :  { %v1024_v57 = vsel %vm367_vm4, %v4598_v4, %v1006_v14  ;;  %v973_v54 = vmul.f32 %v3315_v9, %v958_v20  ;;  %v1188_v28 = vrot.slane %v1106_v40, 7  ;;  %v1289_v2 = vrot.slane %v3554_v42, 1  ;;  %v1084_v20 = vpop.permute.xlu1 %1083 }
 0x17d   :  { %v1039_v61 = vmul.f32 %v3326_v36, %v1024_v57  ;;  %v990_v32 = vadd.f32 %v974_v29, %v924_v48  ;;  %v1288_v35 = vrot.slane %v1106_v40, 1  ;;  %v1386_v14 = vmul.f32 %v3385_v46, %v1375_v58 }
 0x17e   :  { %v989_v31 = vadd.f32 %v973_v54, %v923_v13  ;;  %v3612_v33 = vmul.f32 %v3304_v38, %v3554_v42  ;;  %v1140_v44 = vsel %vm130_vm1, %v1122_v39, %v1123_v5  ;;  %v1141_v23 = vsel %vm130_vm1, %v1121_v12, %v1122_v39 }
 0x17f   :  { %v1056_v13 = vadd.f32 %v1040_v8, %v990_v32  ;;  %v1156_v48 = vmul.f32 %v3346_v26, %v1141_v23  ;;  %v1157_v58 = vmul.f32 %v3346_v26, %v1140_v44  ;;  %v1336_v30 = vadd.f32 %v1320_v50, %v1270_v55 }
 0x180   :  { %v1055_v19 = vadd.f32 %v1039_v61, %v989_v31  ;;  %v1206_v4 = vsel %vm199_vm2, %v1188_v28, %v1189_v15  ;;  %v4599_v57 = vrot.slane %v3470_v1, 7  ;;  %v4600_v12 = vrot.slane %v3470_v1, 1 }
 0x181   :  { %v1173_v61 = vadd.f32 %v1157_v58, %v1056_v13  ;;  %v1271_v8 = vadd.f32 %v1255_v56, %v1237_v21  ;;  %v1307_v50 = vsel %vm300_vm3, %v1288_v35, %v1289_v2  ;;  %v3640_v55 = vadd.f32 %v1385_v43, %v1335_v25 }
 0x182   :  { %v1207_v54 = vsel %vm199_vm2, %v4599_v57, %v1188_v28  ;;  %v1308_v31 = vsel %vm300_vm3, %v4600_v12, %v1288_v35  ;;  %v1172_v29 = vadd.f32 %v1156_v48, %v1055_v19  ;;  %v1355_v39 = vrot.slane %v3554_v42, 2 }
 0x183   :  { %v1354_v32 = vrot.slane %v1106_v40, 2  ;;  %v3645_v28 = vsel %vm1097_vm6, %v1084_v20, 0.0  ;;  %v1222_v44 = vmul.f32 %v3366_v7, %v1207_v54  ;;  %v1223_v23 = vmul.f32 %v3366_v7, %v1206_v4 }
 0x184   :  { %v1321_v56 = vmul.f32 %v3380_v62, %v1308_v31  ;;  %v909_v21 = vmul.f32 %v3579_v27, %v3290_v53  ;;  %v3652_v19 = vadd.f32 %v1386_v14, %v1336_v30  ;;  %v1256_v35 = vmul.f32 %v3304_v38, %v1106_v40 }
 0x185   :  { %v1322_v25 = vmul.f32 %v3380_v62, %v1307_v50  ;;  %v910_v43 = vmul.f32 %v3018_v47, %v3290_v53  ;;  %v1238_v13 = vadd.f32 %v1222_v44, %v1172_v29  ;;  %v1239_v48 = vadd.f32 %v1223_v23, %v1173_v61  ;;  %v1082_v29 = vpop.permute.xlu0 %1081 }
 0x186   :  { %v1337_v58 = vadd.f32 %v1321_v56, %v1271_v8  ;;  %v1125_v20 = vrot.slane %v3645_v28, 6  ;;  %v1373_v4 = vsel %vm367_vm4, %v1354_v32, %v1355_v39  ;;  %v942_v14 = vrot.slane %v3018_v47, 1 }
 0x187   :  { %v943_v30 = vrot.slane %v3026_v3, 1  ;;  %v1008_v40 = vrot.slane %v3018_v47, 2  ;;  %v4601_v57 = vrot.slane %v3470_v1, 2  ;;  %v1191_v12 = vrot.slane %v3645_v28, 7 }
 0x188   :  { %v4526_v31 = vrot.slane %v3026_v3, 2  ;;  %v925_v61 = vadd.f32 %v909_v21, %v3183_v63  ;;  %v926_v8 = vadd.f32 %v910_v43, %v3185_v6  ;;  %v4602_v47 = vrot.slane %v3579_v27, 1 }
 0x189   :  { %v1374_v54 = vsel %vm367_vm4, %v4601_v57, %v1354_v32  ;;  %v955_v50 = vsel %vm300_vm3, %v942_v14, %v943_v30  ;;  %v4603_v32 = vrot.slane %v3579_v27, 2  ;;  %v1272_v23 = vadd.f32 %v1256_v35, %v1238_v13 }
 0x18a   :  { %v956_v1 = vsel %vm300_vm3, %v4602_v47, %v942_v14  ;;  %v976_v6 = vmul.f32 %v3315_v9, %v955_v50  ;;  %v1021_v56 = vsel %vm367_vm4, %v1008_v40, %v4526_v31  ;;  %v1291_v21 = vrot.slane %v3645_v28, 1 }
 0x18b   :  { %v1022_v44 = vsel %vm367_vm4, %v4603_v32, %v1008_v40  ;;  %v975_v63 = vmul.f32 %v3315_v9, %v956_v1  ;;  %v1042_v14 = vmul.f32 %v3326_v36, %v1021_v56  ;;  %v1108_v27 = vsel %vm1097_vm6, %v1082_v29, 0.0 }
 0x18c   :  { %v1041_v43 = vmul.f32 %v3326_v36, %v1022_v44  ;;  %v992_v35 = vadd.f32 %v976_v6, %v926_v8  ;;  %v1124_v13 = vrot.slane %v1108_v27, 6  ;;  %v1190_v47 = vrot.slane %v1108_v27, 7  ;;  %v1088_v8 = vpop.permute.xlu1 %1087 }
 0x18d   :  { %v991_v57 = vadd.f32 %v975_v63, %v925_v61  ;;  %v1387_v50 = vmul.f32 %v3385_v46, %v1374_v54  ;;  %v1388_v1 = vmul.f32 %v3385_v46, %v1373_v4  ;;  %v1357_v32 = vrot.slane %v3645_v28, 2 }
 0x18e   :  { %v1290_v40 = vrot.slane %v1108_v27, 1  ;;  %v1338_v31 = vadd.f32 %v1322_v25, %v1272_v23  ;;  %v1138_v44 = vsel %vm130_vm1, %v1124_v13, %v1125_v20  ;;  %v1139_v29 = vsel %vm130_vm1, %v1123_v5, %v1124_v13 }
 0x18f   :  { %v1356_v61 = vrot.slane %v1108_v27, 2  ;;  %v1057_v63 = vadd.f32 %v1041_v43, %v991_v57  ;;  %v1058_v54 = vadd.f32 %v1042_v14, %v992_v35  ;;  %v1158_v4 = vmul.f32 %v3346_v26, %v1139_v29 }
 0x190   :  { %v1159_v6 = vmul.f32 %v3346_v26, %v1138_v44  ;;  %v1204_v25 = vsel %vm199_vm2, %v1190_v47, %v1191_v12  ;;  %v1205_v23 = vsel %vm199_vm2, %v1189_v15, %v1190_v47  ;;  %v1305_v5 = vsel %vm300_vm3, %v1290_v40, %v1291_v21 }
 0x191   :  { %v1306_v56 = vsel %vm300_vm3, %v1289_v2, %v1290_v40  ;;  %v1259_v43 = vmul.f32 %v3304_v38, %v3645_v28  ;;  %v1174_v14 = vadd.f32 %v1158_v4, %v1057_v63  ;;  %v3730_v35 = vsel %vm1097_vm6, %v1088_v8, 0.0 }
 0x192   :  { %v1175_v57 = vadd.f32 %v1159_v6, %v1058_v54  ;;  %v3732_v15 = vadd.f32 %v1387_v50, %v1337_v58  ;;  %v3734_v13 = vadd.f32 %v1388_v1, %v1338_v31  ;;  %v1258_v47 = vmul.f32 %v3304_v38, %v1108_v27  ;;  %v1086_v27 = vpop.permute.xlu0 %1085 }
 0x193   :  { %v1273_v44 = vadd.f32 %v3612_v33, %v1239_v48  ;;  %v1224_v29 = vmul.f32 %v3366_v7, %v1205_v23  ;;  %v1225_v2 = vmul.f32 %v3366_v7, %v1204_v25  ;;  %v1323_v40 = vmul.f32 %v3380_v62, %v1306_v56 }
 0x194   :  { %v1324_v63 = vmul.f32 %v3380_v62, %v1305_v5  ;;  %v1371_v58 = vsel %vm367_vm4, %v1356_v61, %v1357_v32  ;;  %v1372_v31 = vsel %vm367_vm4, %v1355_v39, %v1356_v61  ;;  %v1127_v33 = vrot.slane %v3730_v35, 6 }
 0x195   :  { %v1193_v48 = vrot.slane %v3730_v35, 7  ;;  %v1240_v50 = vadd.f32 %v1224_v29, %v1174_v14  ;;  %v1241_v1 = vadd.f32 %v1225_v2, %v1175_v57  ;;  %v911_v8 = vmul.f32 %v3026_v3, %v3290_v53 }
 0x196   :  { %v912_v54 = vmul.f32 %v3106_v10, %v3290_v53  ;;  %v944_v4 = vrot.slane %v3106_v10, 1  ;;  %v945_v42 = vrot.slane %v3114_v45, 1  ;;  %v1010_v6 = vrot.slane %v3106_v10, 2 }
 0x197   :  { %v4527_v39 = vrot.slane %v3114_v45, 2  ;;  %v1339_v61 = vadd.f32 %v1323_v40, %v1273_v44  ;;  %v927_v25 = vadd.f32 %v911_v8, %v3189_v11  ;;  %v1110_v5 = vsel %vm1097_vm6, %v1086_v27, 0.0 }
 0x198   :  { %v928_v23 = vadd.f32 %v912_v54, %v3282_v37  ;;  %v953_v56 = vsel %vm300_vm3, %v944_v4, %v945_v42  ;;  %v954_v10 = vsel %vm300_vm3, %v943_v30, %v944_v4  ;;  %v4604_v37 = vrot.slane %v3026_v3, 2 }
 0x199   :  { %v1019_v11 = vsel %vm367_vm4, %v1010_v6, %v4527_v39  ;;  %v1389_v57 = vmul.f32 %v3385_v46, %v1372_v31  ;;  %v977_v44 = vmul.f32 %v3315_v9, %v954_v10  ;;  %v978_v29 = vmul.f32 %v3315_v9, %v953_v56  ;;  %v1092_v10 = vpop.permute.xlu1 %1091 }
 0x19a   :  { %v1020_v14 = vsel %vm367_vm4, %v4604_v37, %v1010_v6  ;;  %v1274_v40 = vadd.f32 %v1258_v47, %v1240_v50  ;;  %v1044_v30 = vmul.f32 %v3326_v36, %v1019_v11  ;;  %v1126_v27 = vrot.slane %v1110_v5, 6 }
 0x19b   :  { %v1043_v2 = vmul.f32 %v3326_v36, %v1020_v14  ;;  %v1192_v8 = vrot.slane %v1110_v5, 7  ;;  %v1390_v54 = vmul.f32 %v3385_v46, %v1371_v58  ;;  %v993_v4 = vadd.f32 %v977_v44, %v927_v25 }
 0x19c   :  { %v994_v3 = vadd.f32 %v978_v29, %v928_v23  ;;  %v1292_v39 = vrot.slane %v1110_v5, 1  ;;  %v1293_v6 = vrot.slane %v3730_v35, 1  ;;  %v1136_v31 = vsel %vm130_vm1, %v1126_v27, %v1127_v33 }
 0x19d   :  { %v1137_v47 = vsel %vm130_vm1, %v1125_v20, %v1126_v27  ;;  %v1203_v58 = vsel %vm199_vm2, %v1191_v12, %v1192_v8  ;;  %v1059_v50 = vadd.f32 %v1043_v2, %v993_v4  ;;  %v1161_v56 = vmul.f32 %v3346_v26, %v1136_v31 }
 0x19e   :  { %v1060_v25 = vadd.f32 %v1044_v30, %v994_v3  ;;  %v1160_v23 = vmul.f32 %v3346_v26, %v1137_v47  ;;  %v1340_v11 = vadd.f32 %v1324_v63, %v1274_v40  ;;  %v3803_v37 = vmul.f32 %v3304_v38, %v3730_v35 }
 0x19f   :  { %v1202_v20 = vsel %vm199_vm2, %v1192_v8, %v1193_v48  ;;  %v1304_v12 = vsel %vm300_vm3, %v1291_v21, %v1292_v39  ;;  %v1226_v29 = vmul.f32 %v3366_v7, %v1203_v58  ;;  %v1275_v2 = vadd.f32 %v1259_v43, %v1241_v1 }
 0x1a0   :  { %v1176_v14 = vadd.f32 %v1160_v23, %v1059_v50  ;;  %v1177_v44 = vadd.f32 %v1161_v56, %v1060_v25  ;;  %v1359_v63 = vrot.slane %v3730_v35, 2  ;;  %v1303_v40 = vsel %vm300_vm3, %v1292_v39, %v1293_v6 }
 0x1a1   :  { %v1358_v30 = vrot.slane %v1110_v5, 2  ;;  %v3821_v27 = vsel %vm1097_vm6, %v1092_v10, 0.0  ;;  %v1227_v8 = vmul.f32 %v3366_v7, %v1202_v20  ;;  %v1325_v4 = vmul.f32 %v3380_v62, %v1304_v12 }
 0x1a2   :  { %v1242_v21 = vadd.f32 %v1226_v29, %v1176_v14  ;;  %v913_v43 = vmul.f32 %v3114_v45, %v3290_v53  ;;  %v3827_v1 = vadd.f32 %v1389_v57, %v1339_v61  ;;  %v3829_v3 = vadd.f32 %v1390_v54, %v1340_v11  ;;  %v1090_v11 = vpop.permute.xlu0 %1089 }
 0x1a3   :  { %v1260_v31 = vmul.f32 %v3304_v38, %v1110_v5  ;;  %v914_v39 = vmul.f32 %v3204_v22, %v3290_v53  ;;  %v1243_v47 = vadd.f32 %v1227_v8, %v1177_v44  ;;  %v1326_v58 = vmul.f32 %v3380_v62, %v1303_v40 }
 0x1a4   :  { %v1341_v50 = vadd.f32 %v1325_v4, %v1275_v2  ;;  %v1129_v25 = vrot.slane %v3821_v27, 6  ;;  %v1369_v23 = vsel %vm367_vm4, %v1358_v30, %v1359_v63  ;;  %v946_v61 = vrot.slane %v3204_v22, 1 }
 0x1a5   :  { %v947_v57 = vrot.slane %v3211_v60, 1  ;;  %v1012_v5 = vrot.slane %v3204_v22, 2  ;;  %v1276_v54 = vadd.f32 %v1260_v31, %v1242_v21  ;;  %v1370_v56 = vsel %vm367_vm4, %v1357_v32, %v1358_v30 }
 0x1a6   :  { %v1013_v10 = vrot.slane %v3211_v60, 2  ;;  %v929_v20 = vadd.f32 %v913_v43, %v3295_v16  ;;  %v930_v12 = vadd.f32 %v914_v39, %v3310_v41  ;;  %v952_v22 = vsel %vm300_vm3, %v945_v42, %v946_v61 }
 0x1a7   :  { %v951_v14 = vsel %vm300_vm3, %v946_v61, %v947_v57  ;;  %v4605_v28 = vrot.slane %v3114_v45, 2  ;;  %v1195_v44 = vrot.slane %v3821_v27, 7  ;;  %v979_v16 = vmul.f32 %v3315_v9, %v952_v22 }
 0x1a8   :  { %v980_v41 = vmul.f32 %v3315_v9, %v951_v14  ;;  %v1017_v29 = vsel %vm367_vm4, %v1012_v5, %v1013_v10  ;;  %v1391_v2 = vmul.f32 %v3385_v46, %v1370_v56  ;;  %v1112_v40 = vsel %vm1097_vm6, %v1090_v11, 0.0 }
 0x1a9   :  { %v1018_v32 = vsel %vm367_vm4, %v4605_v28, %v1012_v5  ;;  %v1046_v45 = vmul.f32 %v3326_v36, %v1017_v29  ;;  %v995_v30 = vadd.f32 %v979_v16, %v929_v20  ;;  %v1128_v21 = vrot.slane %v1112_v40, 6  ;;  %v1096_v5 = vpop.permute.xlu1 %1095 }
 0x1aa   :  { %v1045_v42 = vmul.f32 %v3326_v36, %v1018_v32  ;;  %v996_v8 = vadd.f32 %v980_v41, %v930_v12  ;;  %v1194_v4 = vrot.slane %v1112_v40, 7  ;;  %v1342_v43 = vadd.f32 %v1326_v58, %v1276_v54 }
 0x1ab   :  { %v1392_v31 = vmul.f32 %v3385_v46, %v1369_v23  ;;  %v1295_v39 = vrot.slane %v3821_v27, 1  ;;  %v1294_v61 = vrot.slane %v1112_v40, 1  ;;  %v1134_v56 = vsel %vm130_vm1, %v1128_v21, %v1129_v25 }
 0x1ac   :  { %v1061_v14 = vadd.f32 %v1045_v42, %v995_v30  ;;  %v1135_v11 = vsel %vm130_vm1, %v1127_v33, %v1128_v21  ;;  %v1360_v20 = vrot.slane %v1112_v40, 2  ;;  %v1062_v12 = vadd.f32 %v1046_v45, %v996_v8 }
 0x1ad   :  { %v1162_v58 = vmul.f32 %v3346_v26, %v1135_v11  ;;  %v1163_v23 = vmul.f32 %v3346_v26, %v1134_v56  ;;  %v1201_v54 = vsel %vm199_vm2, %v1193_v48, %v1194_v4  ;;  %v1361_v22 = vrot.slane %v3821_v27, 2 }
 0x1ae   :  { %v1200_v28 = vsel %vm199_vm2, %v1194_v4, %v1195_v44  ;;  %v1228_v33 = vmul.f32 %v3366_v7, %v1201_v54  ;;  %v3898_v32 = vsel %vm1097_vm6, %v1096_v5, 0.0  ;;  %v1301_v48 = vsel %vm300_vm3, %v1294_v61, %v1295_v39 }
 0x1af   :  { %v1178_v16 = vadd.f32 %v1162_v58, %v1061_v14  ;;  %v1179_v41 = vadd.f32 %v1163_v23, %v1062_v12  ;;  %v1302_v29 = vsel %vm300_vm3, %v1293_v6, %v1294_v61  ;;  %v3908_v42 = vadd.f32 %v1391_v2, %v1341_v50  ;;  %v1094_v23 = vpop.permute.xlu0 %1093 }
 0x1b0   :  { %v3910_v45 = vadd.f32 %v1392_v31, %v1342_v43  ;;  %v3914_v30 = vmul.f32 %v3304_v38, %v3821_v27  ;;  %v1277_v8 = vadd.f32 %v3803_v37, %v1243_v47  ;;  %v1229_v21 = vmul.f32 %v3366_v7, %v1200_v28 }
 0x1b1   :  { %v1244_v4 = vadd.f32 %v1228_v33, %v1178_v16  ;;  %v1262_v5 = vmul.f32 %v3304_v38, %v1112_v40  ;;  %v1368_v6 = vsel %vm367_vm4, %v1359_v63, %v1360_v20  ;;  %v1327_v50 = vmul.f32 %v3380_v62, %v1302_v29 }
 0x1b2   :  { %v1328_v2 = vmul.f32 %v3380_v62, %v1301_v48  ;;  %v1367_v43 = vsel %vm367_vm4, %v1360_v20, %v1361_v22  ;;  %v1131_v37 = vrot.slane %v3898_v32, 6  ;;  %v1245_v47 = vadd.f32 %v1229_v21, %v1179_v41 }
 0x1b3   :  { %v1197_v31 = vrot.slane %v3898_v32, 7  ;;  %v848_v40 = vrot.slane %v3214_v59, 7  ;;  %v915_v35 = vmul.f32 %v3211_v60, %v3290_v53  ;;  %v1278_v63 = vadd.f32 %v1262_v5, %v1244_v4 }
 0x1b4   :  { %v1343_v61 = vadd.f32 %v1327_v50, %v1277_v8  ;;  %v1393_v14 = vmul.f32 %v3385_v46, %v1368_v6  ;;  %v948_v56 = vrot.slane %v3214_v59, 1  ;;  %v1394_v11 = vmul.f32 %v3385_v46, %v1367_v43 }
 0x1b5   :  { %v3939_v20 = vmul.f32 %v3304_v38, %v3898_v32  ;;  %v1297_v12 = vrot.slane %v3898_v32, 1  ;;  %v1014_v58 = vrot.slane %v3214_v59, 2  ;;  %v4606_v54 = vrot.slane %v3211_v60, 7 }
 0x1b6   :  { %v931_v33 = vadd.f32 %v915_v35, %v3377_v49  ;;  %v949_v16 = vsel %vm300_vm3, %v948_v56, 0.0  ;;  %v950_v41 = vsel %vm300_vm3, %v947_v57, %v948_v56  ;;  %v1363_v48 = vrot.slane %v3898_v32, 2 }
 0x1b7   :  { %v849_v28 = vsel %vm199_vm2, %v4606_v54, %v848_v40  ;;  %v916_v29 = vmul.f32 %v3214_v59, %v3290_v53  ;;  %v981_v21 = vmul.f32 %v3315_v9, %v950_v41  ;;  %v1344_v4 = vadd.f32 %v1328_v2, %v1278_v63 }
 0x1b8   :  { %v882_v8 = vmul.f32 %v4584_v51, %v849_v28  ;;  %v1015_v49 = vsel %vm367_vm4, %v1014_v58, 0.0  ;;  %v1016_v5 = vsel %vm367_vm4, %v1013_v10, %v1014_v58  ;;  %v1114_v57 = vsel %vm1097_vm6, %v1094_v23, 0.0  ;;  %v1417_v58 = vpop.permute.xlu1 %1416 }
 0x1b9   :  { %v982_v51 = vmul.f32 %v3315_v9, %v949_v16  ;;  %v997_v53 = vadd.f32 %v981_v21, %v931_v33  ;;  %v1047_v32 = vmul.f32 %v3326_v36, %v1016_v5  ;;  %v3972_v6 = vadd.f32 %v1393_v14, %v1343_v61  ;;  %v1415_v16 = vpop.permute.xlu0 %1414 }
 0x1ba   :  { %v898_v59 = vadd.f32 %v882_v8, %v3371_v52  ;;  %v1130_v50 = vrot.slane %v1114_v57, 6  ;;  %v1196_v2 = vrot.slane %v1114_v57, 7  ;;  %v1296_v60 = vrot.slane %v1114_v57, 1 }
 0x1bb   :  { %v3978_v10 = vsel %vm300_vm3, %v1297_v12, 0.0  ;;  %v1048_v40 = vmul.f32 %v3326_v36, %v1015_v49  ;;  %v1362_v52 = vrot.slane %v1114_v57, 2  ;;  %v3983_v9 = vadd.f32 %v1394_v11, %v1344_v4 }
 0x1bc   :  { %v932_v43 = vadd.f32 %v916_v29, %v898_v59  ;;  %v3987_v35 = vsel %vm367_vm4, %v1363_v48, 0.0  ;;  %v1132_v63 = vsel %vm130_vm1, %v1130_v50, %v1131_v37  ;;  %v1133_v61 = vsel %vm130_vm1, %v1129_v25, %v1130_v50  ;;  %v1421_v49 = vpop.permute.xlu1 %1420 }
 0x1bd   :  { %v1063_v14 = vadd.f32 %v1047_v32, %v997_v53  ;;  %v1164_v56 = vmul.f32 %v3346_v26, %v1133_v61  ;;  %v1165_v11 = vmul.f32 %v3346_v26, %v1132_v63  ;;  %v1198_v37 = vsel %vm199_vm2, %v1196_v2, %v1197_v31 }
 0x1be   :  { %v998_v36 = vadd.f32 %v982_v51, %v932_v43  ;;  %v1199_v25 = vsel %vm199_vm2, %v1195_v44, %v1196_v2  ;;  %v1279_v23 = vadd.f32 %v3914_v30, %v1245_v47  ;;  %v1300_v54 = vsel %vm300_vm3, %v1295_v39, %v1296_v60 }
 0x1bf   :  { %v1180_v33 = vadd.f32 %v1164_v56, %v1063_v14  ;;  %v1299_v26 = vsel %vm300_vm3, %v1296_v60, %v1297_v12  ;;  %v1365_v31 = vsel %vm367_vm4, %v1362_v52, %v1363_v48  ;;  %v1264_v44 = vmul.f32 %v3304_v38, %v1114_v57  ;;  %v1419_v60 = vpop.permute.xlu0 %1418 }
 0x1c0   :  { %v1064_v28 = vadd.f32 %v1048_v40, %v998_v36  ;;  %v1366_v30 = vsel %vm367_vm4, %v1361_v22, %v1362_v52  ;;  %v4022_v47 = vstv %s3967_s28  ;;  %v1230_v12 = vmul.f32 %v3366_v7, %v1199_v25 }
 0x1c1   :  { %v1231_v41 = vmul.f32 %v3366_v7, %v1198_v37  ;;  %v1329_v48 = vmul.f32 %v3380_v62, %v1300_v54  ;;  %v4029_v38 = vmul.f32 %v3380_v62, %v1299_v26  ;;  %v4032_v27 = vmul.f32 %v3385_v46, %v1365_v31 }
 0x1c2   :  { %v1181_v39 = vadd.f32 %v1165_v11, %v1064_v28  ;;  %v4036_v22 = vsel %vm1446_vm7, %v1417_v58, 0.0  ;;  %v4039_v29 = vstv %s3974_s29  ;;  %v1246_v8 = vadd.f32 %v1230_v12, %v1180_v33 }
 0x1c3   :  { %v4041_v21 = vadd.f32 %v1329_v48, %v1279_v23  ;;  %v4044_v4 = vmul.f32 %v3385_v46, %v1366_v30  ;;  %v4047_v7 = vstv %s3981_s0  ;;  %v1466_v5 = vrot.slane %v4036_v22, 6  ;;  %v1425_v48 = vpop.permute.xlu1 %1424 }
 0x1c4   :  { %v1532_v57 = vrot.slane %v4036_v22, 7  ;;  %v4052_v59 = vstv %s3995_s30  ;;  %v4055_v51 = vstv %s3997_s4  ;;  %v4057_v53 = vadd.f32 %v1231_v41, %v1181_v39 }
 0x1c5   :  { %v1632_v32 = vrot.slane %v4036_v22, 1  ;;  %v1698_v50 = vrot.slane %v4036_v22, 2  ;;  %v1449_v2 = vsel %vm1446_vm7, %v1415_v16, 0.0  ;;  %v4065_v63 = vsel %vm1446_vm7, %v1421_v49, 0.0 }
 0x1c6   :  { %v1465_v43 = vrot.slane %v1449_v2, 6  ;;  %v1531_v40 = vrot.slane %v1449_v2, 7  ;;  %v1631_v52 = vrot.slane %v1449_v2, 1  ;;  %v4067_v61 = vadd.f32 %v1264_v44, %v1246_v8 }
 0x1c7   :  { %v1600_v36 = vmul.f32 %v4022_v47, %v4036_v22  ;;  %v1599_v14 = vmul.f32 %v4022_v47, %v1449_v2  ;;  %v1697_v56 = vrot.slane %v1449_v2, 2  ;;  %v1468_v28 = vrot.slane %v4065_v63, 6  ;;  %v1423_v22 = vpop.permute.xlu0 %1422 }
 0x1c8   :  { %v1495_v11 = vsel %vm130_vm1, %v1465_v43, %v1466_v5  ;;  %v1496_v58 = vsel %vm130_vm1, 0.0, %v1465_v43  ;;  %v1561_v37 = vsel %vm199_vm2, %v1531_v40, %v1532_v57  ;;  %v1562_v25 = vsel %vm199_vm2, 0.0, %v1531_v40 }
 0x1c9   :  { %v1499_v23 = vmul.f32 %v4039_v29, %v1496_v58  ;;  %v1500_v54 = vmul.f32 %v4039_v29, %v1495_v11  ;;  %v1534_v33 = vrot.slane %v4065_v63, 7  ;;  %v1565_v26 = vmul.f32 %v4047_v7, %v1562_v25 }
 0x1ca   :  { %v1566_v31 = vmul.f32 %v4047_v7, %v1561_v37  ;;  %v1662_v16 = vsel %vm300_vm3, %v1631_v52, %v1632_v32  ;;  %v1728_v44 = vsel %vm367_vm4, %v1697_v56, %v1698_v50  ;;  %v4094_v12 = vmul.f32 %v4022_v47, %v4065_v63 }
 0x1cb   :  { %v1515_v30 = vadd.f32 %v1499_v23, %v3477_v0  ;;  %v1516_v39 = vadd.f32 %v1500_v54, %v3556_v24  ;;  %v1634_v41 = vrot.slane %v4065_v63, 1  ;;  %v1665_v8 = vmul.f32 %v4052_v59, %v1662_v16 }
 0x1cc   :  { %v1731_v49 = vmul.f32 %v4055_v51, %v1728_v44  ;;  %v1700_v2 = vrot.slane %v4065_v63, 2  ;;  %v1451_v43 = vsel %vm1446_vm7, %v1419_v60, 0.0  ;;  %v4104_v58 = vsel %vm1446_vm7, %v1425_v48, 0.0 }
 0x1cd   :  { %v1581_v0 = vadd.f32 %v1565_v26, %v1515_v30  ;;  %v1582_v40 = vadd.f32 %v1566_v31, %v1516_v39  ;;  %v1467_v24 = vrot.slane %v1451_v43, 6  ;;  %v1533_v52 = vrot.slane %v1451_v43, 7 }
 0x1ce   :  { %v1633_v56 = vrot.slane %v1451_v43, 1  ;;  %v1699_v11 = vrot.slane %v1451_v43, 2  ;;  %v4108_v37 = vsel %vm1446_vm7, %v1423_v22, 0.0  ;;  %v1601_v16 = vmul.f32 %v4022_v47, %v1451_v43 }
 0x1cf   :  { %v1615_v25 = vadd.f32 %v1599_v14, %v1581_v0  ;;  %v1493_v60 = vsel %vm130_vm1, %v1467_v24, %v1468_v28  ;;  %v1494_v23 = vsel %vm130_vm1, %v1466_v5, %v1467_v24  ;;  %v1559_v54 = vsel %vm199_vm2, %v1533_v52, %v1534_v33 }
 0x1d0   :  { %v1501_v26 = vmul.f32 %v4039_v29, %v1494_v23  ;;  %v1502_v31 = vmul.f32 %v4039_v29, %v1493_v60  ;;  %v1560_v14 = vsel %vm199_vm2, %v1532_v57, %v1533_v52  ;;  %v1568_v30 = vmul.f32 %v4047_v7, %v1559_v54 }
 0x1d1   :  { %v1681_v44 = vadd.f32 %v1665_v8, %v1615_v25  ;;  %v1616_v39 = vadd.f32 %v1600_v36, %v1582_v40  ;;  %v1660_v5 = vsel %vm300_vm3, %v1633_v56, %v1634_v41  ;;  %v1567_v0 = vmul.f32 %v4047_v7, %v1560_v14 }
 0x1d2   :  { %v1517_v48 = vadd.f32 %v1501_v26, %v3558_v34  ;;  %v1518_v22 = vadd.f32 %v1502_v31, %v3640_v55  ;;  %v1661_v57 = vsel %vm300_vm3, %v1632_v32, %v1633_v56  ;;  %v1726_v36 = vsel %vm367_vm4, %v1699_v11, %v1700_v2 }
 0x1d3   :  { %v1747_v24 = vadd.f32 %v1731_v49, %v1681_v44  ;;  %v1666_v8 = vmul.f32 %v4052_v59, %v1661_v57  ;;  %v1727_v43 = vsel %vm367_vm4, %v1698_v50, %v1699_v11  ;;  %v1667_v55 = vmul.f32 %v4052_v59, %v1660_v5 }
 0x1d4   :  { %v1583_v40 = vadd.f32 %v1567_v0, %v1517_v48  ;;  %v1584_v34 = vadd.f32 %v1568_v30, %v1518_v22  ;;  %v1470_v52 = vrot.slane %v4104_v58, 6  ;;  %v1732_v32 = vmul.f32 %v4055_v51, %v1727_v43 }
 0x1d5   :  { %1846 = vtanh.f32 %v1747_v24  ;;  %v1682_v25 = vadd.f32 %v1666_v8, %v1616_v39  ;;  %v1536_v49 = vrot.slane %v4104_v58, 7  ;;  %v1733_v60 = vmul.f32 %v4055_v51, %v1726_v36  ;;  %v1429_v24 = vpop.permute.xlu1 %1428  ;;  %v1427_v8 = vpop.permute.xlu0 %1426 }
 0x1d6   :  { %v1617_v56 = vadd.f32 %v1601_v16, %v1583_v40  ;;  %v1636_v23 = vrot.slane %v4104_v58, 1  ;;  %v1469_v54 = vrot.slane %v4108_v37, 6  ;;  %v1702_v11 = vrot.slane %v4104_v58, 2 }
 0x1d7   :  { %v1748_v50 = vadd.f32 %v1732_v32, %v1682_v25  ;;  %v1535_v26 = vrot.slane %v4108_v37, 7  ;;  %v1603_v31 = vmul.f32 %v4022_v47, %v4108_v37  ;;  %v1635_v30 = vrot.slane %v4108_v37, 1 }
 0x1d8   :  { %v1683_v14 = vadd.f32 %v1667_v55, %v1617_v56  ;;  %v1491_v44 = vsel %vm130_vm1, %v1469_v54, %v1470_v52  ;;  %v1492_v16 = vsel %vm130_vm1, %v1468_v28, %v1469_v54  ;;  %v1618_v57 = vadd.f32 %v4094_v12, %v1584_v34 }
 0x1d9   :  { %1848 = vtanh.f32 %v1748_v50  ;;  %v1503_v39 = vmul.f32 %v4039_v29, %v1492_v16  ;;  %v1504_v5 = vmul.f32 %v4039_v29, %v1491_v44  ;;  %v1557_v48 = vsel %vm199_vm2, %v1535_v26, %v1536_v49 }
 0x1da   :  { %v1749_v22 = vadd.f32 %v1733_v60, %v1683_v14  ;;  %v1558_v0 = vsel %vm199_vm2, %v1534_v33, %v1535_v26  ;;  %v1570_v28 = vmul.f32 %v4047_v7, %v1557_v48  ;;  %v1659_v55 = vsel %vm300_vm3, %v1634_v41, %v1635_v30 }
 0x1db   :  { %v1519_v36 = vadd.f32 %v1503_v39, %v3652_v19  ;;  %v1520_v43 = vadd.f32 %v1504_v5, %v3732_v15  ;;  %v1569_v40 = vmul.f32 %v4047_v7, %v1558_v0  ;;  %v1658_v33 = vsel %vm300_vm3, %v1635_v30, %v1636_v23 }
 0x1dc   :  { %1850 = vtanh.f32 %v1749_v22  ;;  %v1668_v12 = vmul.f32 %v4052_v59, %v1659_v55  ;;  %v1701_v34 = vrot.slane %v4108_v37, 2  ;;  %v4187_v15 = vsel %vm1446_vm7, %v1429_v24, 0.0 }
 0x1dd   :  { %v1585_v19 = vadd.f32 %v1569_v40, %v1519_v36  ;;  %v1586_v25 = vadd.f32 %v1570_v28, %v1520_v43  ;;  %v1455_v32 = vsel %vm1446_vm7, %v1427_v8, 0.0  ;;  %v1472_v60 = vrot.slane %v4187_v15, 6 }
 0x1de   :  { %v1684_v41 = vadd.f32 %v1668_v12, %v1618_v57  ;;  %v1724_v56 = vsel %vm367_vm4, %v1701_v34, %v1702_v11  ;;  %v1725_v37 = vsel %vm367_vm4, %v1700_v2, %v1701_v34  ;;  %v1604_v50 = vmul.f32 %v4022_v47, %v4104_v58  ;;  %v1433_v2 = vpop.permute.xlu1 %1432 }
 0x1df   :  { %v1847_v54 = vpop.eup %1846  ;;  %v1619_v26 = vadd.f32 %v1603_v31, %v1585_v19  ;;  %v1669_v14 = vmul.f32 %v4052_v59, %v1658_v33  ;;  %v1734_v44 = vmul.f32 %v4055_v51, %v1725_v37  ;;  %v1735_v16 = vmul.f32 %v4055_v51, %v1724_v56 }
 0x1e0   :  { %1779 = vst [vmem:[#allocation8] sm:$0xff] %v1847_v54  ;;  %v1538_v30 = vrot.slane %v4187_v15, 7  ;;  %v1638_v63 = vrot.slane %v4187_v15, 1  ;;  %v1471_v39 = vrot.slane %v1455_v32, 6  ;;  %v1704_v22 = vrot.slane %v4187_v15, 2 }
 0x1e1   :  { %v1685_v5 = vadd.f32 %v1669_v14, %v1619_v26  ;;  %v1750_v48 = vadd.f32 %v1734_v44, %v1684_v41  ;;  %v1537_v0 = vrot.slane %v1455_v32, 7  ;;  %v1620_v57 = vadd.f32 %v1604_v50, %v1586_v25  ;;  %v1431_v41 = vpop.permute.xlu0 %1430 }
 0x1e2   :  { %v1489_v31 = vsel %vm130_vm1, %v1471_v39, %v1472_v60  ;;  %v1490_v28 = vsel %vm130_vm1, %v1470_v52, %v1471_v39  ;;  %v1637_v24 = vrot.slane %v1455_v32, 1  ;;  %v1606_v34 = vmul.f32 %v4022_v47, %v4187_v15  ;;  %v1437_v26 = vpop.permute.xlu1 %1436 }
 0x1e3   :  { %v1849_v8 = vpop.eup %1848  ;;  %v1751_v36 = vadd.f32 %v1735_v16, %v1685_v5  ;;  %1852 = vtanh.f32 %v1750_v48  ;;  %v1505_v43 = vmul.f32 %v4039_v29, %v1490_v28  ;;  %v1506_v40 = vmul.f32 %v4039_v29, %v1489_v31 }
 0x1e4   :  { %1780 = vst [vmem:[#allocation8 + $0x8] sm:$0xff] %v1849_v8  ;;  %v1555_v55 = vsel %vm199_vm2, %v1537_v0, %v1538_v30  ;;  %v1556_v52 = vsel %vm199_vm2, %v1536_v49, %v1537_v0  ;;  %v1656_v33 = vsel %vm300_vm3, %v1637_v24, %v1638_v63  ;;  %v1657_v12 = vsel %vm300_vm3, %v1636_v23, %v1637_v24 }
 0x1e5   :  { %1854 = vtanh.f32 %v1751_v36  ;;  %v1521_v19 = vadd.f32 %v1505_v43, %v3734_v13  ;;  %v1571_v25 = vmul.f32 %v4047_v7, %v1556_v52  ;;  %v1522_v56 = vadd.f32 %v1506_v40, %v3827_v1 }
 0x1e6   :  { %v1851_v49 = vpop.eup %1850  ;;  %v1605_v37 = vmul.f32 %v4022_v47, %v1455_v32  ;;  %v1670_v54 = vmul.f32 %v4052_v59, %v1657_v12  ;;  %v1703_v50 = vrot.slane %v1455_v32, 2  ;;  %v1572_v23 = vmul.f32 %v4047_v7, %v1555_v55 }
 0x1e7   :  { %1781 = vst [vmem:[#allocation8 + $0x10] sm:$0xff] %v1851_v49  ;;  %v1587_v14 = vadd.f32 %v1571_v25, %v1521_v19  ;;  %v1671_v44 = vmul.f32 %v4052_v59, %v1656_v33  ;;  %v4243_v13 = vsel %vm1446_vm7, %v1433_v2, 0.0  ;;  %v1457_v39 = vsel %vm1446_vm7, %v1431_v41, 0.0 }
 0x1e8   :  { %v1686_v16 = vadd.f32 %v1670_v54, %v1620_v57  ;;  %v1722_v1 = vsel %vm367_vm4, %v1703_v50, %v1704_v22  ;;  %v1723_v32 = vsel %vm367_vm4, %v1702_v11, %v1703_v50  ;;  %v1474_v2 = vrot.slane %v4243_v13, 6 }
 0x1e9   :  { %v1621_v5 = vadd.f32 %v1605_v37, %v1587_v14  ;;  %v1736_v48 = vmul.f32 %v4055_v51, %v1723_v32  ;;  %v4259_v0 = vsel %vm1446_vm7, %v1437_v26, 0.0  ;;  %v1588_v31 = vadd.f32 %v1572_v23, %v1522_v56 }
 0x1ea   :  { %v1737_v28 = vmul.f32 %v4055_v51, %v1722_v1  ;;  %v1540_v58 = vrot.slane %v4243_v13, 7  ;;  %v1640_v57 = vrot.slane %v4243_v13, 1  ;;  %v1473_v8 = vrot.slane %v1457_v39, 6 }
 0x1eb   :  { %v1687_v11 = vadd.f32 %v1671_v44, %v1621_v5  ;;  %v1752_v24 = vadd.f32 %v1736_v48, %v1686_v16  ;;  %v1539_v36 = vrot.slane %v1457_v39, 7  ;;  %v1608_v43 = vmul.f32 %v4022_v47, %v4243_v13 }
 0x1ec   :  { %v1706_v40 = vrot.slane %v4243_v13, 2  ;;  %v1639_v55 = vrot.slane %v1457_v39, 1  ;;  %v1705_v52 = vrot.slane %v1457_v39, 2  ;;  %v1487_v19 = vsel %vm130_vm1, %v1473_v8, %v1474_v2 }
 0x1ed   :  { %v1853_v33 = vpop.eup %1852  ;;  %v1753_v12 = vadd.f32 %v1737_v28, %v1687_v11  ;;  %1856 = vtanh.f32 %v1752_v24  ;;  %v1488_v25 = vsel %vm130_vm1, %v1472_v60, %v1473_v8  ;;  %v1508_v49 = vmul.f32 %v4039_v29, %v1487_v19  ;;  %v1441_v24 = vpop.permute.xlu1 %1440 }
 0x1ee   :  { %1782 = vst [vmem:[#allocation8 + $0x18] sm:$0xff] %v1853_v33  ;;  %v1507_v41 = vmul.f32 %v4039_v29, %v1488_v25  ;;  %v1553_v56 = vsel %vm199_vm2, %v1539_v36, %v1540_v58  ;;  %v1554_v37 = vsel %vm199_vm2, %v1538_v30, %v1539_v36  ;;  %v1622_v60 = vadd.f32 %v1606_v34, %v1588_v31 }
 0x1ef   :  { %v1855_v54 = vpop.eup %1854  ;;  %1858 = vtanh.f32 %v1753_v12  ;;  %v1573_v50 = vmul.f32 %v4047_v7, %v1554_v37  ;;  %v1654_v26 = vsel %vm300_vm3, %v1639_v55, %v1640_v57  ;;  %v1524_v14 = vadd.f32 %v1508_v49, %v3908_v42  ;;  %v1435_v42 = vpop.permute.xlu0 %1434 }
 0x1f0   :  { %1783 = vst [vmem:[#allocation8 + $0x20] sm:$0xff] %v1855_v54  ;;  %v1523_v23 = vadd.f32 %v1507_v41, %v3829_v3  ;;  %v1574_v44 = vmul.f32 %v4047_v7, %v1553_v56  ;;  %v1655_v30 = vsel %vm300_vm3, %v1638_v63, %v1639_v55  ;;  %v1607_v16 = vmul.f32 %v4022_v47, %v1457_v39 }
 0x1f1   :  { %v1672_v34 = vmul.f32 %v4052_v59, %v1655_v30  ;;  %v1720_v1 = vsel %vm367_vm4, %v1705_v52, %v1706_v40  ;;  %v1721_v3 = vsel %vm367_vm4, %v1704_v22, %v1705_v52  ;;  %v1673_v48 = vmul.f32 %v4052_v59, %v1654_v26 }
 0x1f2   :  { %v1589_v32 = vadd.f32 %v1573_v50, %v1523_v23  ;;  %v1590_v5 = vadd.f32 %v1574_v44, %v1524_v14  ;;  %v1476_v63 = vrot.slane %v4259_v0, 6  ;;  %v1738_v31 = vmul.f32 %v4055_v51, %v1721_v3 }
 0x1f3   :  { %v1688_v39 = vadd.f32 %v1672_v34, %v1622_v60  ;;  %v1739_v28 = vmul.f32 %v4055_v51, %v1720_v1  ;;  %v1542_v11 = vrot.slane %v4259_v0, 7  ;;  %v1642_v15 = vrot.slane %v4259_v0, 1 }
 0x1f4   :  { %v1623_v8 = vadd.f32 %v1607_v16, %v1589_v32  ;;  %v1708_v22 = vrot.slane %v4259_v0, 2  ;;  %v1459_v36 = vsel %vm1446_vm7, %v1435_v42, 0.0  ;;  %v1624_v12 = vadd.f32 %v1608_v43, %v1590_v5 }
 0x1f5   :  { %v1754_v55 = vadd.f32 %v1738_v31, %v1688_v39  ;;  %v1475_v52 = vrot.slane %v1459_v36, 6  ;;  %v1541_v33 = vrot.slane %v1459_v36, 7  ;;  %v1641_v25 = vrot.slane %v1459_v36, 1 }
 0x1f6   :  { %v1689_v19 = vadd.f32 %v1673_v48, %v1623_v8  ;;  %v1707_v41 = vrot.slane %v1459_v36, 2  ;;  %v4318_v49 = vsel %vm1446_vm7, %v1441_v24, 0.0  ;;  %v1411_v3 = vadd.f32 %v4044_v4, %v4041_v21 }
 0x1f7   :  { %v1857_v56 = vpop.eup %1856  ;;  %1860 = vtanh.f32 %v1754_v55  ;;  %v1485_v37 = vsel %vm130_vm1, %v1475_v52, %v1476_v63  ;;  %v1486_v54 = vsel %vm130_vm1, %v1474_v2, %v1475_v52  ;;  %v1551_v43 = vsel %vm199_vm2, %v1541_v33, %v1542_v11 }
 0x1f8   :  { %1784 = vst [vmem:[#allocation8 + $0x28] sm:$0xff] %v1857_v56  ;;  %v1755_v50 = vadd.f32 %v1739_v28, %v1689_v19  ;;  %v1509_v60 = vmul.f32 %v4039_v29, %v1486_v54  ;;  %v1510_v26 = vmul.f32 %v4039_v29, %v1485_v37  ;;  %v1552_v23 = vsel %vm199_vm2, %v1540_v58, %v1541_v33 }
 0x1f9   :  { %v1859_v14 = vpop.eup %1858  ;;  %v1575_v44 = vmul.f32 %v4047_v7, %v1552_v23  ;;  %v1576_v2 = vmul.f32 %v4047_v7, %v1551_v43  ;;  %v1652_v30 = vsel %vm300_vm3, %v1641_v25, %v1642_v15  ;;  %v1653_v16 = vsel %vm300_vm3, %v1640_v57, %v1641_v25 }
 0x1fa   :  { %1785 = vst [vmem:[#allocation8 + $0x30] sm:$0xff] %v1859_v14  ;;  %1862 = vtanh.f32 %v1755_v50  ;;  %v1525_v34 = vadd.f32 %v1509_v60, %v3910_v45  ;;  %v1526_v58 = vadd.f32 %v1510_v26, %v3972_v6  ;;  %v1674_v1 = vmul.f32 %v4052_v59, %v1653_v16  ;;  %v1439_v45 = vpop.permute.xlu0 %1438  ;;  %v1445_v14 = vpop.permute.xlu1 %1444 }
 0x1fb   :  { %v1609_v42 = vmul.f32 %v4022_v47, %v1459_v36  ;;  %v1718_v32 = vsel %vm367_vm4, %v1707_v41, %v1708_v22  ;;  %v1719_v57 = vsel %vm367_vm4, %v1706_v40, %v1707_v41  ;;  %v1281_v21 = vadd.f32 %v3939_v20, %v4057_v53 }
 0x1fc   :  { %v1591_v5 = vadd.f32 %v1575_v44, %v1525_v34  ;;  %v1592_v6 = vadd.f32 %v1576_v2, %v1526_v58  ;;  %v1690_v48 = vadd.f32 %v1674_v1, %v1624_v12  ;;  %v1740_v39 = vmul.f32 %v4055_v51, %v1719_v57 }
 0x1fd   :  { %v1610_v4 = vmul.f32 %v4022_v47, %v4259_v0  ;;  %v1675_v31 = vmul.f32 %v4052_v59, %v1652_v30  ;;  %v1478_v28 = vrot.slane %v4318_v49, 6  ;;  %v1544_v40 = vrot.slane %v4318_v49, 7 }
 0x1fe   :  { %v1625_v13 = vadd.f32 %v1609_v42, %v1591_v5  ;;  %v1756_v24 = vadd.f32 %v1740_v39, %v1690_v48  ;;  %v1461_v8 = vsel %vm1446_vm7, %v1439_v45, 0.0  ;;  %v1741_v36 = vmul.f32 %v4055_v51, %v1718_v32  ;;  %v1443_v42 = vpop.permute.xlu0 %1442 }
 0x1ff   :  { %v1644_v55 = vrot.slane %v4318_v49, 1  ;;  %v1477_v52 = vrot.slane %v1461_v8, 6  ;;  %v1543_v20 = vrot.slane %v1461_v8, 7  ;;  %v1626_v33 = vadd.f32 %v1610_v4, %v1592_v6 }
 0x200   :  { %v1691_v53 = vadd.f32 %v1675_v31, %v1625_v13  ;;  %1864 = vtanh.f32 %v1756_v24  ;;  %v1643_v12 = vrot.slane %v1461_v8, 1  ;;  %v1709_v37 = vrot.slane %v1461_v8, 2 }
 0x201   :  { %v1861_v19 = vpop.eup %1860  ;;  %v1483_v25 = vsel %vm130_vm1, %v1477_v52, %v1478_v28  ;;  %v1484_v41 = vsel %vm130_vm1, %v1476_v63, %v1477_v52  ;;  %v1550_v56 = vsel %vm199_vm2, %v1542_v11, %v1543_v20  ;;  %v1549_v60 = vsel %vm199_vm2, %v1543_v20, %v1544_v40 }
 0x202   :  { %1786 = vst [vmem:[#allocation8 + $0x38] sm:$0xff] %v1861_v19  ;;  %v1757_v54 = vadd.f32 %v1741_v36, %v1691_v53  ;;  %v1511_v43 = vmul.f32 %v4039_v29, %v1484_v41  ;;  %v1512_v50 = vmul.f32 %v4039_v29, %v1483_v25  ;;  %v1346_v63 = vadd.f32 %v4029_v38, %v4067_v61 }
 0x203   :  { %v1710_v26 = vrot.slane %v4318_v49, 2  ;;  %v1577_v23 = vmul.f32 %v4047_v7, %v1550_v56  ;;  %v1651_v11 = vsel %vm300_vm3, %v1642_v15, %v1643_v12  ;;  %v1578_v38 = vmul.f32 %v4047_v7, %v1549_v60 }
 0x204   :  { %v1863_v44 = vpop.eup %1862  ;;  %1866 = vtanh.f32 %v1757_v54  ;;  %v1527_v2 = vadd.f32 %v1511_v43, %v3983_v9  ;;  %v1528_v30 = vadd.f32 %v1512_v50, %v1411_v3  ;;  %v1676_v16 = vmul.f32 %v4052_v59, %v1651_v11 }
 0x205   :  { %1787 = vst [vmem:[#allocation8 + $0x40] sm:$0xff] %v1863_v44  ;;  %v1611_v61 = vmul.f32 %v4022_v47, %v1461_v8  ;;  %v1650_v34 = vsel %vm300_vm3, %v1643_v12, %v1644_v55  ;;  %v1717_v15 = vsel %vm367_vm4, %v1708_v22, %v1709_v37  ;;  %v1464_v3 = vsel %vm1446_vm7, %v1445_v14, 0.0 }
 0x206   :  { %v1593_v58 = vadd.f32 %v1577_v23, %v1527_v2  ;;  %v1692_v9 = vadd.f32 %v1676_v16, %v1626_v33  ;;  %v1742_v1 = vmul.f32 %v4055_v51, %v1717_v15  ;;  %v1331_v32 = vmul.f32 %v3380_v62, %v3978_v10 }
 0x207   :  { %v1397_v57 = vmul.f32 %v3385_v46, %v3987_v35  ;;  %v1412_v45 = vadd.f32 %v4032_v27, %v1346_v63  ;;  %v1716_v0 = vsel %vm367_vm4, %v1709_v37, %v1710_v26  ;;  %v1594_v22 = vadd.f32 %v1578_v38, %v1528_v30 }
 0x208   :  { %v1627_v5 = vadd.f32 %v1611_v61, %v1593_v58  ;;  %v1677_v6 = vmul.f32 %v4052_v59, %v1650_v34  ;;  %v1758_v48 = vadd.f32 %v1742_v1, %v1692_v9  ;;  %v1612_v39 = vmul.f32 %v4022_v47, %v4318_v49 }
 0x209   :  { %v1480_v4 = vrot.slane %v1464_v3, 6  ;;  %v1546_v62 = vrot.slane %v1464_v3, 7  ;;  %v1463_v46 = vsel %vm1446_vm7, %v1443_v42, 0.0  ;;  %v1743_v27 = vmul.f32 %v4055_v51, %v1716_v0 }
 0x20a   :  { %v1865_v10 = vpop.eup %1864  ;;  %v1693_v35 = vadd.f32 %v1677_v6, %v1627_v5  ;;  %1868 = vtanh.f32 %v1758_v48  ;;  %v1347_v31 = vadd.f32 %v1331_v32, %v1281_v21  ;;  %v1646_v13 = vrot.slane %v1464_v3, 1 }
 0x20b   :  { %1788 = vst [vmem:[#allocation8 + $0x48] sm:$0xff] %v1865_v10  ;;  %v1712_v24 = vrot.slane %v1464_v3, 2  ;;  %v1479_v8 = vrot.slane %v1463_v46, 6  ;;  %v1545_v36 = vrot.slane %v1463_v46, 7  ;;  %v1628_v20 = vadd.f32 %v1612_v39, %v1594_v22 }
 0x20c   :  { %v1759_v52 = vadd.f32 %v1743_v27, %v1693_v35  ;;  %v1645_v53 = vrot.slane %v1463_v46, 1  ;;  %v1711_v33 = vrot.slane %v1463_v46, 2  ;;  %v1413_v41 = vadd.f32 %v1397_v57, %v1347_v31 }
 0x20d   :  { %v1481_v12 = vsel %vm130_vm1, %v1479_v8, %v1480_v4  ;;  %v1482_v17 = vsel %vm130_vm1, %v1478_v28, %v1479_v8  ;;  %v1547_v21 = vsel %vm199_vm2, %v1545_v36, %v1546_v62  ;;  %v1548_v19 = vsel %vm199_vm2, %v1544_v40, %v1545_v36 }
 0x20e   :  { %v1867_v25 = vpop.eup %1866  ;;  %1870 = vtanh.f32 %v1759_v52  ;;  %v1513_v56 = vmul.f32 %v4039_v29, %v1482_v17  ;;  %v1514_v37 = vmul.f32 %v4039_v29, %v1481_v12  ;;  %v1614_v54 = vmul.f32 %v4022_v47, %v1464_v3 }
 0x20f   :  { %1789 = vst [vmem:[#allocation8 + $0x50] sm:$0xff] %v1867_v25  ;;  %v1647_v28 = vsel %vm300_vm3, %v1646_v13, 0.0  ;;  %v1579_v43 = vmul.f32 %v4047_v7, %v1548_v19  ;;  %v1649_v40 = vsel %vm300_vm3, %v1644_v55, %v1645_v53  ;;  %v1580_v63 = vmul.f32 %v4047_v7, %v1547_v21 }
 0x210   :  { %v1529_v50 = vadd.f32 %v1513_v56, %v1412_v45  ;;  %v1530_v60 = vadd.f32 %v1514_v37, %v1413_v41  ;;  %v1678_v23 = vmul.f32 %v4052_v59, %v1649_v40  ;;  %v1713_v29 = vsel %vm367_vm4, %v1712_v24, 0.0 }
 0x211   :  { %v1613_v11 = vmul.f32 %v4022_v47, %v1463_v46  ;;  %v1648_v14 = vsel %vm300_vm3, %v1645_v53, %v1646_v13  ;;  %v1715_v44 = vsel %vm367_vm4, %v1710_v26, %v1711_v33  ;;  %v1680_v16 = vmul.f32 %v4052_v59, %v1647_v28 }
 0x212   :  { %v1595_v55 = vadd.f32 %v1579_v43, %v1529_v50  ;;  %v1596_v2 = vadd.f32 %v1580_v63, %v1530_v60  ;;  %v1694_v30 = vadd.f32 %v1678_v23, %v1628_v20  ;;  %v1744_v7 = vmul.f32 %v4055_v51, %v1715_v44 }
 0x213   :  { %v1714_v38 = vsel %vm367_vm4, %v1711_v33, %v1712_v24  ;;  %v1679_v15 = vmul.f32 %v4052_v59, %v1648_v14  ;;  %v1746_v49 = vmul.f32 %v4055_v51, %v1713_v29 }
 0x214   :  { %v1869_v61 = vpop.eup %1868  ;;  %v1629_v47 = vadd.f32 %v1613_v11, %v1595_v55  ;;  %v1630_v34 = vadd.f32 %v1614_v54, %v1596_v2  ;;  %v1760_v58 = vadd.f32 %v1744_v7, %v1694_v30  ;;  %v1745_v1 = vmul.f32 %v4055_v51, %v1714_v38 }
 0x215   :  { %1790 = vst [vmem:[#allocation8 + $0x58] sm:$0xff] %v1869_v61 }
 0x216   :  { %v1695_v26 = vadd.f32 %v1679_v15, %v1629_v47  ;;  %v1696_v9 = vadd.f32 %v1680_v16, %v1630_v34  ;;  %1872 = vtanh.f32 %v1760_v58 }
 0x218   :  { %v1871_v3 = vpop.eup %1870  ;;  %v1761_v42 = vadd.f32 %v1745_v1, %v1695_v26  ;;  %v1762_v32 = vadd.f32 %v1746_v49, %v1696_v9 }
 0x219   :  { %1791 = vst [vmem:[#allocation8 + $0x60] sm:$0xff] %v1871_v3 }
 0x21a   :  { %1874 = vtanh.f32 %v1761_v42 }
 0x21b   :  { %1876 = vtanh.f32 %v1762_v32 }
 0x220   :  { %v1873_v18 = vpop.eup %1872 }
 0x221   :  { %1792 = vst [vmem:[#allocation8 + $0x68] sm:$0xff] %v1873_v18 }
 0x224   :  { %v1875_v59 = vpop.eup %1874 }
 0x225   :  { %v1877_v57 = vpop.eup %1876  ;;  %1793 = vst [vmem:[#allocation8 + $0x70] sm:$0xff] %v1875_v59 }
 0x226   :  { %1794 = vst [vmem:[#allocation8 + $0x78] sm:$0xff] %v1877_v57 }
 0x227   :  { %1939 = shalt.err (!%p1936_p3)
}
 0x228   :  { %s1940_s10 = scalar_lea.hbm %s4488_s3, 2048 }
 0x229   :  { %p1941_p4 = scmp.ne.s32.totalorder %s4488_s3, %s1940_s10  ;;  %p1944_p5 = scmp.lt.u32.totalorder %s1940_s10, %s4488_s3 }
 0x22b   :  { %p1946_p6 = pnand %p1944_p5, %p1941_p4 }
 0x22d   :  { %1949 = shalt.err (!%p1946_p6)
}
 0x22e   :  { %1806 = dma.vmem_to_hbm [thread:$0]  %s1801_s6, 2048, %s4488_s3, [#allocation5], %s1957_s1, %s1957_s1, %s1958_s25  }
 0x22f   :  { %1954 = dma.done.wait [#allocation5], 2048  }
 0x230   :  { %1955 = vsyncadd [#allocation5], 4294965248 }
 0x231   :  { %1810 = vsyncpa [#allocation4], 1 }
 0x232   :  { %1811 = vsyncpa [#allocation5], 1 }
 0x233   :  { %1812 = vsyncpa [#allocation6], 1 }

</bundles_post_ra>
